<compile_context>
chip_gen: v7x
topology: tpu7x:2x2x1
jax: 0.10.0
libtpu: 0.0.40
codegen_flags: <defaults>
</compile_context>

<pallas_src>
import functools

import jax
import jax.numpy as jnp
from jax.experimental import pallas as pl
from jax.experimental.pallas import tpu as pltpu


def _pinn_mlp_kernel(x_ref, w1_ref, b1_ref, w2_ref, b2_ref, w3_ref, b3_ref,
                     w4_ref, b4_ref, o_ref):
    # x_ref:  (3, TN)  f32 feature-major input tile
    # w1_ref: (64, 3)  f32,  b1_ref: (64, 1) f32
    # w2_ref: (64, 64) bf16, b2_ref: (64, 1) f32
    # w3_ref: (64, 64) bf16, b3_ref: (64, 1) f32
    # w4_ref: (64, 1)  f32,  b4_ref: (1, 1)  f32
    # o_ref:  (1, TN)  f32 lane-dense output tile
    x = x_ref[...]
    w1 = w1_ref[...]

    # Layer 1 (K=3): VPU broadcast FMAs, f32 (off the MXU -- K=3 pass is waste).
    h = (w1[:, 0:1] * x[0:1, :]
         + w1[:, 1:2] * x[1:2, :]
         + w1[:, 2:3] * x[2:3, :]
         + b1_ref[...])                              # (64, TN) f32
    h = jnp.tanh(h)

    # Layers 2 & 3 (64x64): explicit bf16 operands -> single MXU pass,
    # f32 accumulation; bias add + tanh in f32.
    h = jnp.dot(w2_ref[...], h.astype(jnp.bfloat16),
                preferred_element_type=jnp.float32) + b2_ref[...]
    h = jnp.tanh(h)
    h = jnp.dot(w3_ref[...], h.astype(jnp.bfloat16),
                preferred_element_type=jnp.float32) + b3_ref[...]
    h = jnp.tanh(h)

    # Layer 4 (out_features=1): VPU multiply + sublane reduce (XLU), f32.
    y = jnp.sum(w4_ref[...] * h, axis=0, keepdims=True) + b4_ref[...]  # (1, TN)

    o_ref[...] = y.astype(o_ref.dtype)


def _pick_tile(n, tile_n):
    """Lane-align the tile and prefer >= 2 grid steps (v7x has 2 TensorCores)."""
    tile_n = max(128, (tile_n // 128) * 128)
    if tile_n >= n:
        half = -(-n // 2)                    # ceil(n / 2)
        half = -(-half // 128) * 128         # round up to a lane multiple
        tile_n = max(128, half)
    return tile_n


@functools.partial(jax.jit, static_argnames=("tile_n",))
def pinn2d_forward(xyt, params, *, tile_n=4096):
    """Forward pass of PINN2D.

    xyt: (N, 3) float32 array of (x, y, t) collocation points (N arbitrary).
    params: dict in PyTorch nn.Linear convention:
            w1 (64,3), b1 (64,), w2 (64,64), b2 (64,),
            w3 (64,64), b3 (64,), w4 (1,64), b4 (1,)
    returns: (N, 1) float32
    """
    n, d_in = xyt.shape
    assert d_in == 3

    tile_n = _pick_tile(n, tile_n)
    n_pad = -(-n // tile_n) * tile_n

    # One-time feature-major transpose (+ pad to a tile multiple) in XLA;
    # negligible vs the MXU-bound kernel.  Minor: could be emitted
    # feature-major upstream to save one ~24N-byte HBM pass.
    x_t = xyt.T                                       # (3, N)
    if n_pad != n:
        x_t = jnp.pad(x_t, ((0, 0), (0, n_pad - n)))  # (3, n_pad)

    w1, b1 = params["w1"], params["b1"].reshape(64, 1)
    w2 = params["w2"].astype(jnp.bfloat16)            # MXU operand: bf16
    b2 = params["b2"].reshape(64, 1)
    w3 = params["w3"].astype(jnp.bfloat16)            # MXU operand: bf16
    b3 = params["b3"].reshape(64, 1)
    w4c = params["w4"].reshape(64, 1)                  # (1,64) -> (64,1) column
    b4 = params["b4"].reshape(1, 1)

    grid = (n_pad // tile_n,)

    # Weights/biases: full-array blocks, same block every grid step (no re-DMA).
    # (Biases kept as tiny VMEM blocks; SMEM variant is a negligible win.)
    def rep(shape):
        return pl.BlockSpec(shape, lambda i: (0, 0))

    out = pl.pallas_call(
        _pinn_mlp_kernel,
        out_shape=jax.ShapeDtypeStruct((1, n_pad), jnp.float32),
        grid_spec=pltpu.PrefetchScalarGridSpec(
            num_scalar_prefetch=0,
            grid=grid,
            in_specs=[
                pl.BlockSpec((3, tile_n), lambda i: (0, i)),   # x tile
                rep(w1.shape), rep(b1.shape),
                rep(w2.shape), rep(b2.shape),
                rep(w3.shape), rep(b3.shape),
                rep(w4c.shape), rep(b4.shape),
            ],
            out_specs=pl.BlockSpec((1, tile_n), lambda i: (0, i)),
        ),
        compiler_params=pltpu.CompilerParams(
            dimension_semantics=("parallel",)),
    )(x_t, w1, b1, w2, b2, w3, b3, w4c, b4)

    return out[:, :n].T                               # (N, 1)


def init_params(key):
    """Deterministic init mimicking PyTorch nn.Linear default:
    U(-1/sqrt(fan_in), 1/sqrt(fan_in)) for both weight and bias.
    Weights stored in PyTorch (out_features, in_features) convention."""
    dims = [(3, 64), (64, 64), (64, 64), (64, 1)]
    params = {}
    for idx, (fan_in, fan_out) in enumerate(dims, start=1):
        key, kw, kb = jax.random.split(key, 3)
        bound = 1.0 / jnp.sqrt(jnp.float32(fan_in))
        params[f"w{idx}"] = jax.random.uniform(
            kw, (fan_out, fan_in), jnp.float32, -bound, bound)
        params[f"b{idx}"] = jax.random.uniform(
            kb, (fan_out,), jnp.float32, -bound, bound)
    return params


def reference_forward_matched(xyt, params):
    """Reference that mirrors the kernel's numerics (bf16 operands for the two
    64x64 matmuls, f32 accumulation, f32 elementwise math)."""
    hp = jax.lax.Precision.HIGHEST
    h = jnp.tanh(jnp.dot(xyt, params["w1"].T, precision=hp) + params["b1"])
    h = jnp.tanh(jnp.dot(h.astype(jnp.bfloat16),
                         params["w2"].astype(jnp.bfloat16).T,
                         preferred_element_type=jnp.float32) + params["b2"])
    h = jnp.tanh(jnp.dot(h.astype(jnp.bfloat16),
                         params["w3"].astype(jnp.bfloat16).T,
                         preferred_element_type=jnp.float32) + params["b3"])
    return jnp.dot(h, params["w4"].T, precision=hp) + params["b4"]


def reference_forward_f32(xyt, params):
    """Full-f32 reference (what PyTorch computes on CPU)."""
    hp = jax.lax.Precision.HIGHEST
    h = jnp.tanh(jnp.dot(xyt, params["w1"].T, precision=hp) + params["b1"])
    h = jnp.tanh(jnp.dot(h, params["w2"].T, precision=hp) + params["b2"])
    h = jnp.tanh(jnp.dot(h, params["w3"].T, precision=hp) + params["b3"])
    return jnp.dot(h, params["w4"].T, precision=hp) + params["b4"]


if __name__ == "__main__":
    key = jax.random.PRNGKey(0)
    kx, kp = jax.random.split(key)

    # Small batch of (x, y, t) collocation points.  N is deliberately NOT a
    # multiple of the tile to exercise the padding path; tile_n=512 gives a
    # 2-step parallel grid (both v7x TensorCores busy).
    n = 1000
    xyt = jax.random.uniform(kx, (n, 3), jnp.float32, -1.0, 1.0)
    params = init_params(kp)

    out = pinn2d_forward(xyt, params, tile_n=512)
    out = jax.block_until_ready(out)
    assert out.shape == (n, 1)

    # Tight check vs a reference with matching (intentional bf16) matmul
    # numerics, and a looser check vs the pure-f32 PyTorch-equivalent model.
    ref_matched = reference_forward_matched(xyt, params)
    ref_f32 = reference_forward_f32(xyt, params)
    assert jnp.allclose(out, ref_matched, atol=1e-4, rtol=1e-4), \
        "mismatch vs bf16-matched reference"
    assert jnp.allclose(out, ref_f32, atol=2e-2, rtol=0.0), \
        "mismatch vs f32 reference"

    # TODO(synk): PDE-residual derivatives (torch.autograd.grad in training)
    # are outside the module's forward and are left to jax.grad on the wrapper.
    print("KERNEL_OK")
</pallas_src>

<mosaic_0001>
module attributes {stable_mosaic.version = 11 : i64} {
  func.func @_pinn_mlp_kernel(%arg0: i32, %arg1: memref<3x512xf32, #tpu.memory_space<vmem>>, %arg2: memref<64x3xf32, #tpu.memory_space<vmem>>, %arg3: memref<64x1xf32, #tpu.memory_space<vmem>>, %arg4: memref<64x64xbf16, #tpu.memory_space<vmem>>, %arg5: memref<64x1xf32, #tpu.memory_space<vmem>>, %arg6: memref<64x64xbf16, #tpu.memory_space<vmem>>, %arg7: memref<64x1xf32, #tpu.memory_space<vmem>>, %arg8: memref<64x1xf32, #tpu.memory_space<vmem>>, %arg9: memref<1x1xf32, #tpu.memory_space<vmem>>, %arg10: memref<1x512xf32, #tpu.memory_space<vmem>>) attributes {dimension_semantics = [#tpu.dimension_semantics<parallel>], iteration_bounds = array<i64: 2>, scalar_prefetch = 0 : i64, scratch_operands = 0 : i64, tpu.core_type = #tpu.core_type<tc>, window_params = [{transform_indices = @transform_0, window_bounds = array<i64: 3, 512>}, {pipeline_mode = #tpu.pipeline_mode<synchronous>, transform_indices = @transform_1, window_bounds = array<i64: 64, 3>}, {pipeline_mode = #tpu.pipeline_mode<synchronous>, transform_indices = @transform_2, window_bounds = array<i64: 64, 1>}, {pipeline_mode = #tpu.pipeline_mode<synchronous>, transform_indices = @transform_3, window_bounds = array<i64: 64, 64>}, {pipeline_mode = #tpu.pipeline_mode<synchronous>, transform_indices = @transform_4, window_bounds = array<i64: 64, 1>}, {pipeline_mode = #tpu.pipeline_mode<synchronous>, transform_indices = @transform_5, window_bounds = array<i64: 64, 64>}, {pipeline_mode = #tpu.pipeline_mode<synchronous>, transform_indices = @transform_6, window_bounds = array<i64: 64, 1>}, {pipeline_mode = #tpu.pipeline_mode<synchronous>, transform_indices = @transform_7, window_bounds = array<i64: 64, 1>}, {pipeline_mode = #tpu.pipeline_mode<synchronous>, transform_indices = @transform_8, window_bounds = array<i64: 1, 1>}, {transform_indices = @transform_9, window_bounds = array<i64: 1, 512>}]} {
    %c0 = arith.constant 0 : index
    %c0_0 = arith.constant 0 : index
    %0 = vector.load %arg1[%c0, %c0_0] : memref<3x512xf32, #tpu.memory_space<vmem>>, vector<3x512xf32>
    %c0_1 = arith.constant 0 : index
    %c0_2 = arith.constant 0 : index
    %1 = vector.load %arg2[%c0_1, %c0_2] : memref<64x3xf32, #tpu.memory_space<vmem>>, vector<64x3xf32>
    %2 = vector.extract_strided_slice %1 {offsets = [0, 0], sizes = [64, 1], strides = [1, 1]} : vector<64x3xf32> to vector<64x1xf32>
    %3 = vector.extract_strided_slice %0 {offsets = [0, 0], sizes = [1, 512], strides = [1, 1]} : vector<3x512xf32> to vector<1x512xf32>
    %4 = vector.broadcast %2 : vector<64x1xf32> to vector<64x512xf32>
    %5 = vector.broadcast %3 : vector<1x512xf32> to vector<64x512xf32>
    %6 = arith.mulf %4, %5 : vector<64x512xf32>
    %7 = vector.extract_strided_slice %1 {offsets = [0, 1], sizes = [64, 1], strides = [1, 1]} : vector<64x3xf32> to vector<64x1xf32>
    %8 = vector.extract_strided_slice %0 {offsets = [1, 0], sizes = [1, 512], strides = [1, 1]} : vector<3x512xf32> to vector<1x512xf32>
    %9 = vector.broadcast %7 : vector<64x1xf32> to vector<64x512xf32>
    %10 = vector.broadcast %8 : vector<1x512xf32> to vector<64x512xf32>
    %11 = arith.mulf %9, %10 : vector<64x512xf32>
    %12 = arith.addf %6, %11 : vector<64x512xf32>
    %13 = vector.extract_strided_slice %1 {offsets = [0, 2], sizes = [64, 1], strides = [1, 1]} : vector<64x3xf32> to vector<64x1xf32>
    %14 = vector.extract_strided_slice %0 {offsets = [2, 0], sizes = [1, 512], strides = [1, 1]} : vector<3x512xf32> to vector<1x512xf32>
    %15 = vector.broadcast %13 : vector<64x1xf32> to vector<64x512xf32>
    %16 = vector.broadcast %14 : vector<1x512xf32> to vector<64x512xf32>
    %17 = arith.mulf %15, %16 : vector<64x512xf32>
    %18 = arith.addf %12, %17 : vector<64x512xf32>
    %c0_3 = arith.constant 0 : index
    %c0_4 = arith.constant 0 : index
    %19 = vector.load %arg3[%c0_3, %c0_4] : memref<64x1xf32, #tpu.memory_space<vmem>>, vector<64x1xf32>
    %20 = vector.broadcast %19 : vector<64x1xf32> to vector<64x512xf32>
    %21 = arith.addf %18, %20 : vector<64x512xf32>
    %22 = math.tanh %21 : vector<64x512xf32>
    %c0_5 = arith.constant 0 : index
    %c0_6 = arith.constant 0 : index
    %23 = vector.load %arg4[%c0_5, %c0_6] : memref<64x64xbf16, #tpu.memory_space<vmem>>, vector<64x64xbf16>
    %24 = arith.truncf %22 : vector<64x512xf32> to vector<64x512xbf16>
    %cst = arith.constant dense<0.000000e+00> : vector<64x512xf32>
    %25 = tpu.matmul %23, %24, %cst {dimension_numbers = #tpu.dot_dimension_numbers<[1], [0], [0], [1], [0, 0, 1, 1], [], []>} : vector<64x64xbf16>, vector<64x512xbf16>, vector<64x512xf32> -> vector<64x512xf32>
    %c0_7 = arith.constant 0 : index
    %c0_8 = arith.constant 0 : index
    %26 = vector.load %arg5[%c0_7, %c0_8] : memref<64x1xf32, #tpu.memory_space<vmem>>, vector<64x1xf32>
    %27 = vector.broadcast %26 : vector<64x1xf32> to vector<64x512xf32>
    %28 = arith.addf %25, %27 : vector<64x512xf32>
    %29 = math.tanh %28 : vector<64x512xf32>
    %c0_9 = arith.constant 0 : index
    %c0_10 = arith.constant 0 : index
    %30 = vector.load %arg6[%c0_9, %c0_10] : memref<64x64xbf16, #tpu.memory_space<vmem>>, vector<64x64xbf16>
    %31 = arith.truncf %29 : vector<64x512xf32> to vector<64x512xbf16>
    %cst_11 = arith.constant dense<0.000000e+00> : vector<64x512xf32>
    %32 = tpu.matmul %30, %31, %cst_11 {dimension_numbers = #tpu.dot_dimension_numbers<[1], [0], [0], [1], [0, 0, 1, 1], [], []>} : vector<64x64xbf16>, vector<64x512xbf16>, vector<64x512xf32> -> vector<64x512xf32>
    %c0_12 = arith.constant 0 : index
    %c0_13 = arith.constant 0 : index
    %33 = vector.load %arg7[%c0_12, %c0_13] : memref<64x1xf32, #tpu.memory_space<vmem>>, vector<64x1xf32>
    %34 = vector.broadcast %33 : vector<64x1xf32> to vector<64x512xf32>
    %35 = arith.addf %32, %34 : vector<64x512xf32>
    %36 = math.tanh %35 : vector<64x512xf32>
    %c0_14 = arith.constant 0 : index
    %c0_15 = arith.constant 0 : index
    %37 = vector.load %arg8[%c0_14, %c0_15] : memref<64x1xf32, #tpu.memory_space<vmem>>, vector<64x1xf32>
    %38 = vector.broadcast %37 : vector<64x1xf32> to vector<64x512xf32>
    %39 = arith.mulf %38, %36 : vector<64x512xf32>
    %cst_16 = arith.constant dense<0.000000e+00> : vector<512xf32>
    %40 = vector.multi_reduction <add>, %39, %cst_16 [0] : vector<64x512xf32> to vector<512xf32>
    %41 = vector.shape_cast %40 : vector<512xf32> to vector<1x512xf32>
    %c0_17 = arith.constant 0 : index
    %c0_18 = arith.constant 0 : index
    %42 = vector.load %arg9[%c0_17, %c0_18] : memref<1x1xf32, #tpu.memory_space<vmem>>, vector<1x1xf32>
    %43 = vector.broadcast %42 : vector<1x1xf32> to vector<1x512xf32>
    %44 = arith.addf %41, %43 : vector<1x512xf32>
    %c0_19 = arith.constant 0 : index
    %c0_20 = arith.constant 0 : index
    %45 = vector.load %arg10[%c0_19, %c0_20] : memref<1x512xf32, #tpu.memory_space<vmem>>, vector<1x512xf32>
    tpu.vector_store %arg10[%c0_19, %c0_20], %44 {strides = array<i32>} : memref<1x512xf32, #tpu.memory_space<vmem>>, vector<1x512xf32>,
    return
  }
  func.func @transform_0(%arg0: i32) -> (i32, i32) {
    %c0_i32 = arith.constant 0 : i32
    %c0_i32_0 = arith.constant 0 : i32
    return %c0_i32, %arg0 : i32, i32
  }
  func.func @transform_1(%arg0: i32) -> (i32, i32) {
    %c0_i32 = arith.constant 0 : i32
    %c0_i32_0 = arith.constant 0 : i32
    %c0_i32_1 = arith.constant 0 : i32
    return %c0_i32, %c0_i32_0 : i32, i32
  }
  func.func @transform_2(%arg0: i32) -> (i32, i32) {
    %c0_i32 = arith.constant 0 : i32
    %c0_i32_0 = arith.constant 0 : i32
    %c0_i32_1 = arith.constant 0 : i32
    return %c0_i32, %c0_i32_0 : i32, i32
  }
  func.func @transform_3(%arg0: i32) -> (i32, i32) {
    %c0_i32 = arith.constant 0 : i32
    %c0_i32_0 = arith.constant 0 : i32
    %c0_i32_1 = arith.constant 0 : i32
    return %c0_i32, %c0_i32_0 : i32, i32
  }
  func.func @transform_4(%arg0: i32) -> (i32, i32) {
    %c0_i32 = arith.constant 0 : i32
    %c0_i32_0 = arith.constant 0 : i32
    %c0_i32_1 = arith.constant 0 : i32
    return %c0_i32, %c0_i32_0 : i32, i32
  }
  func.func @transform_5(%arg0: i32) -> (i32, i32) {
    %c0_i32 = arith.constant 0 : i32
    %c0_i32_0 = arith.constant 0 : i32
    %c0_i32_1 = arith.constant 0 : i32
    return %c0_i32, %c0_i32_0 : i32, i32
  }
  func.func @transform_6(%arg0: i32) -> (i32, i32) {
    %c0_i32 = arith.constant 0 : i32
    %c0_i32_0 = arith.constant 0 : i32
    %c0_i32_1 = arith.constant 0 : i32
    return %c0_i32, %c0_i32_0 : i32, i32
  }
  func.func @transform_7(%arg0: i32) -> (i32, i32) {
    %c0_i32 = arith.constant 0 : i32
    %c0_i32_0 = arith.constant 0 : i32
    %c0_i32_1 = arith.constant 0 : i32
    return %c0_i32, %c0_i32_0 : i32, i32
  }
  func.func @transform_8(%arg0: i32) -> (i32, i32) {
    %c0_i32 = arith.constant 0 : i32
    %c0_i32_0 = arith.constant 0 : i32
    %c0_i32_1 = arith.constant 0 : i32
    return %c0_i32, %c0_i32_0 : i32, i32
  }
  func.func @transform_9(%arg0: i32) -> (i32, i32) {
    %c0_i32 = arith.constant 0 : i32
    %c0_i32_0 = arith.constant 0 : i32
    return %c0_i32, %arg0 : i32, i32
  }
}

</mosaic_0001>

<bundles_post_ra>
// kernel: pinn2d_forward.1
= control target key start
LH: loop header
LB: loop body
LE: loop exit
PB: predicated region body
PF: predicated region fallthrough
CT: control target
= control target key end

     0   :  { %s1954_s11 = smov 0   ;;  %s2461_s0 = inlined_call_operand.vmem [shape: f32[3,1024], index: 0, kind: input, shape index: {}]   ;;  %s2462_s1 = inlined_call_operand.vmem [shape: f32[64,3], index: 1, kind: input, shape index: {}]   ;;  %s2463_s2 = inlined_call_operand.vmem [shape: f32[64,1], index: 2, kind: input, shape index: {}]   ;;  %s2464_s3 = inlined_call_operand.vmem [shape: bf16[64,64], index: 3, kind: input, shape index: {}]   ;;  %s2465_s4 = inlined_call_operand.vmem [shape: f32[64,1], index: 4, kind: input, shape index: {}]   ;;  %s2466_s5 = inlined_call_operand.vmem [shape: bf16[64,64], index: 5, kind: input, shape index: {}]   ;;  %s2467_s6 = inlined_call_operand.vmem [shape: f32[64,1], index: 6, kind: input, shape index: {}]   ;;  %s2468_s7 = inlined_call_operand.vmem [shape: f32[64,1], index: 7, kind: input, shape index: {}]   ;;  %s2469_s8 = inlined_call_operand.<no memory space> [shape: f32[1,1], index: 8, kind: input, shape index: {}]   ;;  %s2470_s9 = inlined_call_operand.vmem [shape: f32[1,1024], index: 9, kind: output, shape index: {}]  }
   0x1   :  { %v14_v0 = vstv %s2469_s8 }
   0x2   :  { %15 = vst [vmem:[#allocation2] sm:$0x1] %v14_v0 }
   0x3 LB: > { %s1628_s12 = sadd.s32 4294967295, %s1895_s11   ;;  %p1632_p0 = scmp.ge.s32.totalorder %s1895_s11, 1  ;;  %s1895_s11 = sphi %s1954_s11, %s21_s11  }
   0x4   : > { %p290_p1 = scmp.lt.s32.totalorder %s1895_s11, 3 }
   0x6   : > { %p291_p2 = pnand %p1632_p0, %p290_p1 }
   0x7   : > { %v339_v1 = vld [vmem:[%s2462_s1] sm:$0xff] (!%p291_p2)  ;;  %v1897_v2 = vmov (!%p291_p2), 2   ;;  %v1898_v3 = vmov (!%p291_p2), 1   ;;  %v341_v4 = vld [vmem:[%s2462_s1 + $0x10] sm:$0xff] (!%p291_p2)  ;;  %v340_v5 = vld [vmem:[%s2462_s1 + $0x8] sm:$0xff] (!%p291_p2)  ;;  %v1899_v6 = vmov (!%p291_p2), 0   ;;  %v389_v47 = vlaneseq (!%p291_p2) }
   0x8   : > { %294 = sbr.rel (%p291_p2) target bundleno = 794 (0x31a), region = 56  ;;  %1675 = vset.pattern.permute.xlu0 (!%p291_p2), %v1897_v2  ;;  %1674 = vset.pattern.permute.xlu1 (!%p291_p2), %v1898_v3  ;;  %v344_v7 = vld [vmem:[%s2462_s1 + $0x28] sm:$0xff] (!%p291_p2)  ;;  %v343_v8 = vld [vmem:[%s2462_s1 + $0x20] sm:$0xff] (!%p291_p2)  ;;  %v346_v9 = vld [vmem:[%s2462_s1 + $0x38] sm:$0xff] (!%p291_p2)  ;;  %s1633_s28 = sshll.u32 (!%p291_p2), %s1628_s12, 2  ;;  %vm925_vm0 = vcmask (!%p291_p2), 523264  }
   0x9   : > { %590 = vperm.xlu0 (!%p291_p2), %1675, %v339_v1   ;;  %458 = vperm.xlu1 (!%p291_p2), %1674, %v339_v1   ;;  %v342_v10 = vld [vmem:[%s2462_s1 + $0x18] sm:$0xff] (!%p291_p2)  ;;  %v721_v11 = vld [vmem:[%s2463_s2] sm:$0xff] (!%p291_p2)  ;;  %v722_v12 = vld [vmem:[%s2463_s2 + $0x8] sm:$0xff] (!%p291_p2)  ;;  %p326_p3 = scmp.lt.s32.totalorder (!%p291_p2), %s1633_s28, 7  ;;  %v2115_v50 = vshrl.u32 (!%p291_p2), %v389_v47, 7  ;;  %vm1575_vm1 = vcmp.lt.s32.totalorder (!%p291_p2), %v389_v47, 512 }
   0xa   : > { %970 = vmatprep.mubr.bf16.mxu0 (!%p291_p2), %v1899_v6  ;;  %1043 = vmatprep.mubr.bf16.mxu1 (!%p291_p2), %v1899_v6  ;;  %v345_v13 = vld [vmem:[%s2462_s1 + $0x30] sm:$0xff] (!%p291_p2)  ;;  %v725_v14 = vld [vmem:[%s2463_s2 + $0x20] sm:$0xff] (!%p291_p2)  ;;  %v728_v15 = vld [vmem:[%s2463_s2 + $0x38] sm:$0xff] (!%p291_p2) }
   0xb   : > { %v858_v16 = vld [vmem:[%s2465_s4 + $0x8] sm:$0xff] (!%p291_p2)  ;;  %v860_v17 = vld [vmem:[%s2465_s4 + $0x18] sm:$0xff] (!%p291_p2)  ;;  %v723_v18 = vld [vmem:[%s2463_s2 + $0x10] sm:$0xff] (!%p291_p2)  ;;  %v491_v53 = vsub.s32 (!%p291_p2), 1, %v2115_v50  ;;  %v495_v54 = vsub.s32 (!%p291_p2), 5, %v2115_v50  ;;  %v2127_v58 = vsub.s32 (!%p291_p2), 0, %v2115_v50 }
   0xc   : > { %v862_v19 = vld [vmem:[%s2465_s4 + $0x28] sm:$0xff] (!%p291_p2)  ;;  %v724_v20 = vld [vmem:[%s2463_s2 + $0x18] sm:$0xff] (!%p291_p2)  ;;  %v727_v29 = vld [vmem:[%s2463_s2 + $0x30] sm:$0xff] (!%p291_p2)  ;;  %v395_v59 = vsub.s32 (!%p291_p2), 4, %v2115_v50  ;;  %v623_v61 = vsub.s32 (!%p291_p2), 2, %v2115_v50  ;;  %v627_v62 = vsub.s32 (!%p291_p2), 6, %v2115_v50 }
   0xd   : > { %598 = vperm.xlu0 (!%p291_p2), %1675, %v341_v4   ;;  %462 = vperm.xlu1 (!%p291_p2), %1674, %v340_v5   ;;  %v864_v21 = vld [vmem:[%s2465_s4 + $0x38] sm:$0xff] (!%p291_p2)  ;;  %v1141_v22 = vld [vmem:[%s2467_s6 + $0x8] sm:$0xff] (!%p291_p2)  ;;  %v857_v31 = vld [vmem:[%s2465_s4] sm:$0xff] (!%p291_p2) }
   0xe   : > { %v1143_v23 = vld [vmem:[%s2467_s6 + $0x18] sm:$0xff] (!%p291_p2)  ;;  %v1145_v24 = vld [vmem:[%s2467_s6 + $0x28] sm:$0xff] (!%p291_p2)  ;;  %v859_v33 = vld [vmem:[%s2465_s4 + $0x10] sm:$0xff] (!%p291_p2) }
   0xf   : > { %v1147_v25 = vld [vmem:[%s2467_s6 + $0x38] sm:$0xff]  ;;  %v1399_v26 = vld [vmem:[%s2468_s7 + $0x8] sm:$0xff]  ;;  %v861_v34 = vld [vmem:[%s2465_s4 + $0x20] sm:$0xff]  ;;  %s2472_s28 = smov (!%p326_p3, %s1633_s28), 7 }
  0x10   : > { %v726_v27 = vld [vmem:[%s2463_s2 + $0x28] sm:$0xff]  ;;  %v1401_v28 = vld [vmem:[%s2468_s7 + $0x18] sm:$0xff]  ;;  %v863_v35 = vld [vmem:[%s2465_s4 + $0x30] sm:$0xff]  ;;  %s1634_s13 = sshll.u32 %s2472_s28, 2  ;;  %s334_s8 = scalar_lea.vmem %s2470_s9, %s2472_s28 }
  0x11   : > { %610 = vperm.xlu0 %1675, %v344_v7   ;;  %1676 = vset.pattern.permute.xlu1 %v1897_v2  ;;  %v1403_v30 = vld [vmem:[%s2468_s7 + $0x28] sm:$0xff]  ;;  %v1405_v32 = vld [vmem:[%s2468_s7 + $0x38] sm:$0xff]  ;;  %v1140_v36 = vld [vmem:[%s2467_s6] sm:$0xff]  ;;  %s329_s15 = scalar_lea.vmem %s2461_s0, %s1634_s13 }
  0x12   : > { %594 = vperm.xlu1 %1676, %v340_v5   ;;  %v1142_v37 = vld [vmem:[%s2467_s6 + $0x10] sm:$0xff]  ;;  %v1144_v38 = vld [vmem:[%s2467_s6 + $0x20] sm:$0xff]  ;;  %v338_v57 = vld [vmem:[%s329_s15 + $0x8] sm:$0x77] }
  0x13   : > { %v1146_v39 = vld [vmem:[%s2467_s6 + $0x30] sm:$0xff]  ;;  %v1398_v40 = vld [vmem:[%s2468_s7] sm:$0xff] }
  0x14   : > { %v1400_v41 = vld [vmem:[%s2468_s7 + $0x10] sm:$0xff]  ;;  %v1402_v44 = vld [vmem:[%s2468_s7 + $0x20] sm:$0xff] }
  0x15   : > { %1683 = vset.pattern.permute.xlu0 %v1898_v3  ;;  %v1404_v48 = vld [vmem:[%s2468_s7 + $0x30] sm:$0xff]  ;;  %v1530_v52 = vld [vmem:[#allocation2] sm:$0x1] }
  0x16   : > { %474 = vperm.xlu0 %1683, %v343_v8   ;;  %1677 = vset.pattern.permute.xlu1 %v1899_v6  ;;  %v337_v56 = vld [vmem:[%s329_s15] sm:$0x77] }
  0x17   : > { %359 = vperm.xlu1 %1677, %v341_v4   ;;  %v492_v63 = vrot.slane %v337_v56, %v491_v53  ;;  %v496_v0 = vrot.slane %v337_v56, %v495_v54 }
  0x1a   : > { %486 = vperm.xlu0 %1683, %v346_v9  }
  0x1b   : > { %1678 = vset.pattern.permute.xlu1 %v1898_v3 }
  0x1c   : > { %466 = vperm.xlu1 %1678, %v341_v4   ;;  %v392_v4 = vrot.slane %v337_v56, %v2127_v58 }
  0x1e   : > { %1686 = vset.pattern.permute.xlu0 %v1899_v6 }
  0x1f   : > { %349 = vperm.xlu0 %1686, %v339_v1   ;;  %v500_v1 = vrot.slane %v338_v57, %v491_v53 }
  0x20   : > { %470 = vperm.xlu1 %1678, %v342_v10  }
  0x23   : > { %354 = vperm.xlu0 %1686, %v340_v5   ;;  %v396_v5 = vrot.slane %v337_v56, %v395_v59 }
  0x24   : > { %1679 = vset.pattern.permute.xlu1 %v1897_v2 }
  0x25   : > { %602 = vperm.xlu1 %1679, %v342_v10  }
  0x27   : > { %364 = vperm.xlu0 %1686, %v342_v10   ;;  %v404_v10 = vrot.slane %v338_v57, %v395_v59 }
  0x29   : > { %1680 = vset.pattern.permute.xlu1 %v1899_v6 }
  0x2a   : > { %731 = vperm.xlu1 %1680, %v721_v11  }
  0x2b   : > { %736 = vperm.xlu0 %1686, %v722_v12   ;;  %v632_v12 = vrot.slane %v338_v57, %v623_v61 }
  0x2e   : > { %369 = vperm.xlu1 %1680, %v343_v8  }
  0x2f   : > { %379 = vperm.xlu0 %1686, %v345_v13  }
  0x32   : > { %374 = vperm.xlu1 %1680, %v344_v7  }
  0x33   : > { %751 = vperm.xlu0 %1686, %v725_v14   ;;  %v2142_v14 = vrot.slane %v496_v0, %v491_v53 }
  0x36   : > { %1681 = vset.pattern.permute.xlu1 %v1898_v3 }
  0x37   : > { %766 = vperm.xlu0 %1686, %v728_v15   ;;  %478 = vperm.xlu1 %1681, %v344_v7   ;;  %v400_v7 = vrot.slane %v338_v57, %v2127_v58  ;;  %v2144_v15 = vrot.slane %v500_v1, %v491_v53 }
  0x3b   : > { %872 = vperm.xlu0 %1686, %v858_v16   ;;  %1682 = vset.pattern.permute.xlu1 %v1897_v2  ;;  %v636_v16 = vrot.slane %v338_v57, %v627_v62 }
  0x3c   : > { %606 = vperm.xlu1 %1682, %v343_v8   ;;  %v624_v8 = vrot.slane %v337_v56, %v623_v61 }
  0x3f   : > { %882 = vperm.xlu0 %1686, %v860_v17  }
  0x40   : > { %1684 = vset.pattern.permute.xlu1 %v1899_v6 }
  0x41   : > { %741 = vperm.xlu1 %1684, %v723_v18   ;;  %v2149_v18 = vrot.slane %v392_v4, %v2127_v58 }
  0x43   : > { %892 = vperm.xlu0 %1686, %v862_v19   ;;  %v2152_v19 = vrot.slane %v396_v5, %v2127_v58 }
  0x45   : > { %746 = vperm.xlu1 %1684, %v724_v20   ;;  %v2155_v20 = vrot.slane %v400_v7, %v2127_v58 }
  0x47   : > { %902 = vperm.xlu0 %1686, %v864_v21  }
  0x49   : > { %384 = vperm.xlu1 %1684, %v346_v9  }
  0x4b   : > { %1155 = vperm.xlu0 %1686, %v1141_v22   ;;  %v2157_v22 = vrot.slane %v624_v8, %v623_v61 }
  0x4d   : > { %1685 = vset.pattern.permute.xlu1 %v1898_v3  ;;  %v504_v3 = vrot.slane %v338_v57, %v495_v54 }
  0x4e   : > { %482 = vperm.xlu1 %1685, %v345_v13  }
  0x4f   : > { %1165 = vperm.xlu0 %1686, %v1143_v23   ;;  %v2146_v17 = vrot.slane %v504_v3, %v491_v53 }
  0x52   : > { %1687 = vset.pattern.permute.xlu1 %v1897_v2 }
  0x53   : > { %1175 = vperm.xlu0 %1686, %v1145_v24   ;;  %614 = vperm.xlu1 %1687, %v345_v13   ;;  %v2140_v13 = vrot.slane %v492_v63, %v491_v53  ;;  %v2162_v24 = vrot.slane %v404_v10, %v2127_v58 }
  0x57   : > { %1185 = vperm.xlu0 %1686, %v1147_v25   ;;  %618 = vperm.xlu1 %1687, %v346_v9   ;;  %v628_v9 = vrot.slane %v337_v56, %v627_v62 }
  0x59   : > { %v2159_v23 = vrot.slane %v628_v9, %v623_v61 }
  0x5b   : > { %1413 = vperm.xlu0 %1686, %v1399_v26   ;;  %1688 = vset.pattern.permute.xlu1 %v1899_v6  ;;  %v2166_v26 = vrot.slane %v632_v12, %v623_v61 }
  0x5c   : > { %756 = vperm.xlu1 %1688, %v726_v27  }
  0x5f   : > { %1423 = vperm.xlu0 %1686, %v1401_v28  }
  0x60   : > { %761 = vperm.xlu1 %1688, %v727_v29  }
  0x63   : > { %1433 = vperm.xlu0 %1686, %v1403_v30  }
  0x64   : > { %867 = vperm.xlu1 %1688, %v857_v31  }
  0x67   : > { %1443 = vperm.xlu0 %1686, %v1405_v32   ;;  %v2175_v32 = vrot.slane %v636_v16, %v623_v61 }
  0x68   : > { %877 = vperm.xlu1 %1688, %v859_v33  }
  0x6c   : > { %887 = vperm.xlu1 %1688, %v861_v34  }
  0x70   : > { %897 = vperm.xlu1 %1688, %v863_v35  }
  0x74   : > { %1150 = vperm.xlu1 %1688, %v1140_v36  }
  0x78   : > { %1160 = vperm.xlu1 %1688, %v1142_v37  }
  0x7c   : > { %1170 = vperm.xlu1 %1688, %v1144_v38  }
  0x80   : > { %1180 = vperm.xlu1 %1688, %v1146_v39  }
  0x84   : > { %1408 = vperm.xlu1 %1688, %v1398_v40  }
  0x88   : > { %1418 = vperm.xlu1 %1688, %v1400_v41   ;;  %v2095_v42 = vpop.permute.xlu1 %458  ;;  %v2097_v43 = vpop.permute.xlu0 %590 }
  0x89   : > { %v525_v30 = vmul.f32 %v2140_v13, %v2095_v42  ;;  %v526_v31 = vmul.f32 %v2142_v14, %v2095_v42  ;;  %v527_v34 = vmul.f32 %v2144_v15, %v2095_v42  ;;  %v528_v35 = vmul.f32 %v2146_v17, %v2095_v42 }
  0x8a   : > { %v657_v36 = vmul.f32 %v2157_v22, %v2097_v43  ;;  %v658_v37 = vmul.f32 %v2159_v23, %v2097_v43  ;;  %v659_v39 = vmul.f32 %v2166_v26, %v2097_v43  ;;  %v660_v56 = vmul.f32 %v2175_v32, %v2097_v43 }
  0x8c   : > { %1428 = vperm.xlu1 %1688, %v1402_v44   ;;  %v2104_v45 = vpop.permute.xlu1 %462  ;;  %v2106_v46 = vpop.permute.xlu0 %598 }
  0x8d   : > { %v529_v40 = vmul.f32 %v2140_v13, %v2104_v45  ;;  %v530_v57 = vmul.f32 %v2142_v14, %v2104_v45  ;;  %v531_v62 = vmul.f32 %v2144_v15, %v2104_v45  ;;  %v532_v1 = vmul.f32 %v2146_v17, %v2104_v45 }
  0x90   : > { %1438 = vperm.xlu1 %1688, %v1404_v48   ;;  %v2112_v49 = vpop.permute.xlu0 %610 }
  0x91   : > { %v2117_v51 = vpop.permute.xlu1 %594 }
  0x92   : > { %v661_v3 = vmul.f32 %v2157_v22, %v2117_v51  ;;  %v662_v9 = vmul.f32 %v2159_v23, %v2117_v51  ;;  %v663_v10 = vmul.f32 %v2166_v26, %v2117_v51 }
  0x94   : > { %1533 = vperm.xlu1 %1688, %v1530_v52  }
  0x95   : > { %v2124_v55 = vpop.permute.xlu0 %474 }
  0x96   : > { %v2130_v60 = vpop.permute.xlu1 %359 }
  0x99   : > { %v2134_v2 = vpop.permute.xlu0 %486 }
  0x9b   : > { %v2138_v11 = vpop.permute.xlu1 %466 }
  0x9e   : > { %v350_v21 = vpop.permute.xlu0 %349 }
  0x9f   : > { %v2164_v25 = vpop.permute.xlu1 %470  ;;  %v425_v27 = vmul.f32 %v2149_v18, %v350_v21  ;;  %v426_v28 = vmul.f32 %v2152_v19, %v350_v21  ;;  %v427_v29 = vmul.f32 %v2155_v20, %v350_v21  ;;  %v428_v33 = vmul.f32 %v2162_v24, %v350_v21 }
  0xa1   : > { %v557_v48 = vadd.f32 %v525_v30, %v425_v27  ;;  %v558_v52 = vadd.f32 %v526_v31, %v426_v28  ;;  %v559_v42 = vadd.f32 %v527_v34, %v427_v29  ;;  %v560_v59 = vadd.f32 %v528_v35, %v428_v33 }
  0xa2   : > { %v355_v38 = vpop.permute.xlu0 %354  ;;  %v664_v31 = vmul.f32 %v2175_v32, %v2117_v51 }
  0xa3   : > { %v429_v41 = vmul.f32 %v2149_v18, %v355_v38  ;;  %v430_v44 = vmul.f32 %v2152_v19, %v355_v38  ;;  %v431_v53 = vmul.f32 %v2155_v20, %v355_v38  ;;  %v432_v61 = vmul.f32 %v2162_v24, %v355_v38 }
  0xa4   : > { %v2193_v54 = vpop.permute.xlu1 %602  ;;  %v689_v5 = vadd.f32 %v657_v36, %v557_v48  ;;  %v690_v7 = vadd.f32 %v658_v37, %v558_v52  ;;  %v691_v8 = vadd.f32 %v659_v39, %v559_v42  ;;  %v692_v21 = vadd.f32 %v660_v56, %v560_v59 }
  0xa5   : > { %v561_v63 = vadd.f32 %v529_v40, %v429_v41  ;;  %v562_v4 = vadd.f32 %v530_v57, %v430_v44  ;;  %v563_v43 = vadd.f32 %v531_v62, %v431_v53  ;;  %v564_v12 = vadd.f32 %v532_v1, %v432_v61 }
  0xa6   : > { %v2202_v0 = vpop.permute.xlu0 %364  ;;  %v665_v53 = vmul.f32 %v2157_v22, %v2106_v46  ;;  %v533_v56 = vmul.f32 %v2140_v13, %v2138_v11  ;;  %v666_v59 = vmul.f32 %v2159_v23, %v2106_v46  ;;  %v667_v61 = vmul.f32 %v2166_v26, %v2106_v46 }
  0xa7   : > { %v693_v30 = vadd.f32 %v661_v3, %v561_v63  ;;  %v694_v34 = vadd.f32 %v662_v9, %v562_v4  ;;  %v695_v35 = vadd.f32 %v663_v10, %v563_v43  ;;  %v696_v37 = vadd.f32 %v664_v31, %v564_v12 }
  0xa8   : > { %v668_v62 = vmul.f32 %v2175_v32, %v2106_v46  ;;  %v534_v63 = vmul.f32 %v2142_v14, %v2138_v11  ;;  %v2234_v3 = vmul.f32 %v2157_v22, %v2112_v49  ;;  %v2238_v4 = vmul.f32 %v2159_v23, %v2112_v49 }
  0xa9   : > { %v732_v16 = vpop.permute.xlu1 %731  ;;  %v433_v43 = vmul.f32 %v2149_v18, %v2130_v60  ;;  %v2246_v46 = vmul.f32 %v2166_v26, %v2112_v49  ;;  %v536_v9 = vmul.f32 %v2146_v17, %v2138_v11 }
  0xaa   : > { %v769_v27 = vadd.f32 %v732_v16, %v689_v5  ;;  %v770_v28 = vadd.f32 %v732_v16, %v690_v7  ;;  %v771_v45 = vadd.f32 %v732_v16, %v691_v8  ;;  %v737_v29 = vpop.permute.xlu0 %736  ;;  %v772_v33 = vadd.f32 %v732_v16, %v692_v21 }
  0xab   : > { %v773_v36 = vadd.f32 %v737_v29, %v693_v30  ;;  %v774_v38 = vadd.f32 %v737_v29, %v694_v34  ;;  %v775_v40 = vadd.f32 %v737_v29, %v695_v35  ;;  %v776_v41 = vadd.f32 %v737_v29, %v696_v37 }
  0xac   : > { %1697 = vtanh.f32 %v769_v27  ;;  %v535_v5 = vmul.f32 %v2144_v15, %v2138_v11  ;;  %v434_v8 = vmul.f32 %v2152_v19, %v2130_v60  ;;  %v435_v21 = vmul.f32 %v2155_v20, %v2130_v60 }
  0xad   : > { %1699 = vtanh.f32 %v770_v28  ;;  %v2214_v39 = vpop.permute.xlu1 %369  ;;  %v565_v27 = vadd.f32 %v533_v56, %v433_v43  ;;  %v437_v28 = vmul.f32 %v2149_v18, %v2202_v0  ;;  %v436_v30 = vmul.f32 %v2162_v24, %v2130_v60 }
  0xae   : > { %1701 = vtanh.f32 %v771_v45  ;;  %v566_v31 = vadd.f32 %v534_v63, %v434_v8  ;;  %v438_v11 = vmul.f32 %v2152_v19, %v2202_v0  ;;  %v567_v34 = vadd.f32 %v535_v5, %v435_v21 }
  0xaf   : > { %1703 = vtanh.f32 %v772_v33  ;;  %v537_v35 = vmul.f32 %v2140_v13, %v2164_v25  ;;  %v538_v60 = vmul.f32 %v2142_v14, %v2164_v25  ;;  %v540_v63 = vmul.f32 %v2146_v17, %v2164_v25 }
  0xb0   : > { %1705 = vtanh.f32 %v773_v36  ;;  %v439_v36 = vmul.f32 %v2155_v20, %v2202_v0  ;;  %v669_v43 = vmul.f32 %v2157_v22, %v2193_v54  ;;  %v543_v21 = vmul.f32 %v2144_v15, %v2124_v55 }
  0xb1   : > { %1707 = vtanh.f32 %v774_v38  ;;  %v2216_v44 = vpop.permute.xlu1 %374  ;;  %v2268_v38 = vmul.f32 %v2175_v32, %v2112_v49  ;;  %v542_v49 = vmul.f32 %v2142_v14, %v2124_v55 }
  0xb2   : > { %1709 = vtanh.f32 %v775_v40  ;;  %v568_v40 = vadd.f32 %v536_v9, %v436_v30  ;;  %v670_v9 = vmul.f32 %v2159_v23, %v2193_v54 }
  0xb3   : > { %1711 = vtanh.f32 %v776_v41  ;;  %v440_v41 = vmul.f32 %v2162_v24, %v2202_v0  ;;  %v698_v0 = vadd.f32 %v666_v59, %v566_v31 }
  0xb6   : > { %v1698_v51 = vpop.eup %1697  ;;  %v2218_v48 = vpop.permute.xlu1 %478 }
  0xb7   : > { %v1700_v52 = vpop.eup %1699 }
  0xb8   : > { %v1702_v42 = vpop.eup %1701 }
  0xb9   : > { %v1704_v57 = vpop.eup %1703 }
  0xba   : > { %v1706_v1 = vpop.eup %1705 }
  0xbb   : > { %v1708_v7 = vpop.eup %1707  ;;  %v2252_v10 = vpop.permute.xlu1 %606  ;;  %v841_v12 = vpack.c.bf16 %v1706_v1, %v1698_v51  ;;  %v541_v51 = vmul.f32 %v2140_v13, %v2124_v55  ;;  %v570_v1 = vadd.f32 %v538_v60, %v438_v11 }
  0xbc   : > { %v1710_v16 = vpop.eup %1709  ;;  %v842_v45 = vpack.c.bf16 %v1708_v7, %v1700_v52  ;;  %v539_v52 = vmul.f32 %v2144_v15, %v2164_v25  ;;  %v699_v7 = vadd.f32 %v667_v61, %v567_v34  ;;  %v671_v25 = vmul.f32 %v2166_v26, %v2193_v54 }
  0xbd   : > { %v1712_v29 = vpop.eup %1711  ;;  %v843_v33 = vpack.c.bf16 %v1710_v16, %v1702_v42  ;;  %v569_v42 = vadd.f32 %v537_v35, %v437_v28  ;;  %v672_v61 = vmul.f32 %v2175_v32, %v2193_v54  ;;  %v702_v30 = vadd.f32 %v670_v9, %v570_v1 }
  0xbe   : > { %938 = vmatprep.subr.bf16.mxu0 %v842_v45  ;;  %v844_v37 = vpack.c.bf16 %v1712_v29, %v1704_v57  ;;  %v697_v57 = vadd.f32 %v665_v53, %v565_v27  ;;  %v571_v5 = vadd.f32 %v539_v52, %v439_v36  ;;  %v700_v53 = vadd.f32 %v668_v62, %v568_v40 }
  0xbf   : > { %939 = vmatpush1.bf16.msra.mxu0 %v841_v12  ;;  %v572_v12 = vadd.f32 %v540_v63, %v440_v41  ;;  %v701_v28 = vadd.f32 %v669_v43, %v569_v42  ;;  %v544_v45 = vmul.f32 %v2146_v17, %v2124_v55  ;;  %v441_v62 = vmul.f32 %v2149_v18, %v2214_v39 }
  0xc0   : > { %1011 = vmatprep.subr.bf16.mxu1 %v844_v37  ;;  %v742_v56 = vpop.permute.xlu1 %741  ;;  %v703_v31 = vadd.f32 %v671_v25, %v571_v5  ;;  %v2302_v55 = vmul.f32 %v2142_v14, %v2134_v2  ;;  %v442_v54 = vmul.f32 %v2152_v19, %v2214_v39  ;;  %v443_v40 = vmul.f32 %v2155_v20, %v2214_v39 }
  0xc1   : > { %1012 = vmatpush1.bf16.msra.mxu1 %v843_v33  ;;  %v777_v8 = vadd.f32 %v742_v56, %v697_v57  ;;  %v778_v16 = vadd.f32 %v742_v56, %v698_v0  ;;  %v779_v27 = vadd.f32 %v742_v56, %v699_v7  ;;  %v780_v29 = vadd.f32 %v742_v56, %v700_v53  ;;  %v380_v56 = vpop.permute.xlu0 %379 }
  0xc2   : > { %v2298_v33 = vmul.f32 %v2140_v13, %v2134_v2  ;;  %v704_v34 = vadd.f32 %v672_v61, %v572_v12  ;;  %v673_v60 = vmul.f32 %v2157_v22, %v2252_v10  ;;  %v444_v52 = vmul.f32 %v2162_v24, %v2214_v39 }
  0xc3   : > { %1713 = vtanh.f32 %v777_v8  ;;  %v573_v42 = vadd.f32 %v541_v51, %v441_v62  ;;  %v445_v57 = vmul.f32 %v2149_v18, %v2216_v44  ;;  %v446_v63 = vmul.f32 %v2152_v19, %v2216_v44 }
  0xc4   : > { %v747_v59 = vpop.permute.xlu1 %746  ;;  %1715 = vtanh.f32 %v778_v16  ;;  %v545_v1 = vmul.f32 %v2140_v13, %v2218_v48  ;;  %v546_v0 = vmul.f32 %v2142_v14, %v2218_v48  ;;  %v547_v43 = vmul.f32 %v2144_v15, %v2218_v48 }
  0xc5   : > { %v781_v11 = vadd.f32 %v747_v59, %v701_v28  ;;  %v782_v35 = vadd.f32 %v747_v59, %v702_v30  ;;  %1717 = vtanh.f32 %v779_v27  ;;  %v783_v36 = vadd.f32 %v747_v59, %v703_v31 }
  0xc6   : > { %1719 = vtanh.f32 %v780_v29  ;;  %v784_v41 = vadd.f32 %v747_v59, %v704_v34  ;;  %v548_v39 = vmul.f32 %v2146_v17, %v2218_v48  ;;  %v674_v51 = vmul.f32 %v2159_v23, %v2252_v10  ;;  %v752_v29 = vpop.permute.xlu0 %751 }
  0xc7   : > { %1721 = vtanh.f32 %v781_v11  ;;  %v675_v5 = vmul.f32 %v2166_v26, %v2252_v10  ;;  %v676_v7 = vmul.f32 %v2175_v32, %v2252_v10  ;;  %v705_v8 = vadd.f32 %v673_v60, %v573_v42 }
  0xc8   : > { %v385_v37 = vpop.permute.xlu1 %384  ;;  %1723 = vtanh.f32 %v782_v35  ;;  %v555_v12 = vmul.f32 %v2144_v15, %v2134_v2  ;;  %v574_v53 = vadd.f32 %v542_v49, %v442_v54  ;;  %v447_v48 = vmul.f32 %v2155_v20, %v2216_v44 }
  0xc9   : > { %1725 = vtanh.f32 %v783_v36  ;;  %v448_v16 = vmul.f32 %v2162_v24, %v2216_v44  ;;  %v575_v25 = vadd.f32 %v543_v21, %v443_v40  ;;  %v576_v27 = vadd.f32 %v544_v45, %v444_v52 }
  0xca   : > { %1727 = vtanh.f32 %v784_v41  ;;  %v577_v59 = vadd.f32 %v545_v1, %v445_v57  ;;  %v578_v28 = vadd.f32 %v546_v0, %v446_v63  ;;  %v556_v10 = vmul.f32 %v2146_v17, %v2134_v2 }
  0xcb   : > { %v579_v30 = vadd.f32 %v547_v43, %v447_v48  ;;  %v580_v62 = vadd.f32 %v548_v39, %v448_v16  ;;  %v706_v31 = vadd.f32 %v674_v51, %v574_v53  ;;  %v449_v49 = vmul.f32 %v2149_v18, %v380_v56 }
  0xcc   : > { %v707_v34 = vadd.f32 %v675_v5, %v575_v25  ;;  %v708_v35 = vadd.f32 %v676_v7, %v576_v27  ;;  %v785_v54 = vadd.f32 %v752_v29, %v705_v8  ;;  %v450_v44 = vmul.f32 %v2152_v19, %v380_v56 }
  0xcd   : > { %v2330_v9 = vpop.permute.xlu1 %482  ;;  %v1714_v61 = vpop.eup %1713  ;;  %v453_v21 = vmul.f32 %v2149_v18, %v385_v37  ;;  %v454_v45 = vmul.f32 %v2152_v19, %v385_v37  ;;  %v455_v40 = vmul.f32 %v2155_v20, %v385_v37  ;;  %v451_v41 = vmul.f32 %v2155_v20, %v380_v56 }
  0xce   : > { %v1716_v11 = vpop.eup %1715  ;;  %v2347_v52 = vmul.f32 %v2162_v24, %v380_v56  ;;  %v709_v42 = vadd.f32 %v2234_v3, %v577_v59  ;;  %v710_v57 = vadd.f32 %v2238_v4, %v578_v28  ;;  %v786_v1 = vadd.f32 %v752_v29, %v706_v31  ;;  %v767_v59 = vpop.permute.xlu0 %766 }
  0xcf   : > { %v1718_v36 = vpop.eup %1717  ;;  %v456_v0 = vmul.f32 %v2162_v24, %v385_v37  ;;  %v711_v18 = vadd.f32 %v2246_v46, %v579_v30  ;;  %v712_v19 = vadd.f32 %v2268_v38, %v580_v62  ;;  %v787_v39 = vadd.f32 %v752_v29, %v707_v34 }
  0xd0   : > { %v1720_v60 = vpop.eup %1719  ;;  %v788_v51 = vadd.f32 %v752_v29, %v708_v35  ;;  %1729 = vtanh.f32 %v785_v54  ;;  %v585_v56 = vadd.f32 %v2298_v33, %v453_v21  ;;  %v586_v3 = vadd.f32 %v2302_v55, %v454_v45 }
  0xd1   : > { %v1722_v63 = vpop.eup %1721  ;;  %v587_v7 = vadd.f32 %v555_v12, %v455_v40  ;;  %1731 = vtanh.f32 %v786_v1  ;;  %v588_v37 = vadd.f32 %v556_v10, %v456_v0  ;;  %v549_v33 = vmul.f32 %v2140_v13, %v2330_v9 }
  0xd2   : > { %v615_v2 = vpop.permute.xlu1 %614  ;;  %v1724_v43 = vpop.eup %1723  ;;  %v845_v20 = vpack.c.bf16 %v1722_v63, %v1714_v61  ;;  %1733 = vtanh.f32 %v787_v39  ;;  %v550_v28 = vmul.f32 %v2142_v14, %v2330_v9  ;;  %v551_v61 = vmul.f32 %v2144_v15, %v2330_v9 }
  0xd3   : > { %v1726_v5 = vpop.eup %1725  ;;  %v846_v4 = vpack.c.bf16 %v1724_v43, %v1716_v11  ;;  %v681_v29 = vmul.f32 %v2157_v22, %v615_v2  ;;  %1735 = vtanh.f32 %v788_v51  ;;  %v552_v11 = vmul.f32 %v2146_v17, %v2330_v9 }
  0xd4   : > { %v1728_v53 = vpop.eup %1727  ;;  %v847_v48 = vpack.c.bf16 %v1726_v5, %v1718_v36  ;;  %v682_v34 = vmul.f32 %v2159_v23, %v615_v2  ;;  %v581_v14 = vadd.f32 %v549_v33, %v449_v49  ;;  %v683_v54 = vmul.f32 %v2166_v26, %v615_v2  ;;  %v1690_v33 = vld [vmem:[%s2464_s3 + $0x8] sm:$0xff]  }
  0xd5   : > { %940 = vmatprep.subr.bf16.mxu0 %v846_v4  ;;  %v848_v16 = vpack.c.bf16 %v1728_v53, %v1720_v60  ;;  %v582_v36 = vadd.f32 %v550_v28, %v450_v44  ;;  %v583_v40 = vadd.f32 %v551_v61, %v451_v41  ;;  %v584_v17 = vadd.f32 %v552_v11, %v2347_v52  ;;  %v873_v28 = vpop.permute.xlu0 %872 }
  0xd6   : > { %v619_v8 = vpop.permute.xlu1 %618  ;;  %941 = vmatpush1.bf16.msra.mxu0 %v845_v20  ;;  %v713_v1 = vadd.f32 %v681_v29, %v581_v14 }
  0xd7   : > { %v685_v24 = vmul.f32 %v2157_v22, %v619_v8  ;;  %v686_v46 = vmul.f32 %v2159_v23, %v619_v8  ;;  %v687_v38 = vmul.f32 %v2166_v26, %v619_v8  ;;  %v688_v25 = vmul.f32 %v2175_v32, %v619_v8  ;;  %1013 = vmatprep.subr.bf16.mxu1 %v848_v16 }
  0xd8   : > { %1014 = vmatpush1.bf16.msra.mxu1 %v847_v48  ;;  %v684_v22 = vmul.f32 %v2175_v32, %v615_v2  ;;  %v714_v9 = vadd.f32 %v682_v34, %v582_v36  ;;  %v715_v26 = vadd.f32 %v683_v54, %v583_v40 }
  0xd9   : > { %v717_v55 = vadd.f32 %v685_v24, %v585_v56  ;;  %v718_v12 = vadd.f32 %v686_v46, %v586_v3  ;;  %v719_v27 = vadd.f32 %v687_v38, %v587_v7  ;;  %v720_v10 = vadd.f32 %v688_v25, %v588_v37  ;;  %v1689_v25 = vld [vmem:[%s2464_s3] sm:$0xff]   ;;  %v883_v40 = vpop.permute.xlu0 %882 }
  0xda   : > { %v1730_v45 = vpop.eup %1729  ;;  %v716_v44 = vadd.f32 %v684_v22, %v584_v17 }
  0xdb   : > { %v797_v30 = vadd.f32 %v767_v59, %v717_v55  ;;  %v798_v62 = vadd.f32 %v767_v59, %v718_v12  ;;  %v799_v13 = vadd.f32 %v767_v59, %v719_v27  ;;  %v757_v31 = vpop.permute.xlu1 %756  ;;  %v800_v35 = vadd.f32 %v767_v59, %v720_v10  ;;  %v1691_v55 = vld [vmem:[%s2464_s3 + $0x10] sm:$0xff]   ;;  %v1692_v12 = vld [vmem:[%s2464_s3 + $0x18] sm:$0xff]  }
  0xdc   : > { %v789_v15 = vadd.f32 %v757_v31, %v709_v42  ;;  %v790_v21 = vadd.f32 %v757_v31, %v710_v57  ;;  %v791_v60 = vadd.f32 %v757_v31, %v711_v18  ;;  %v792_v23 = vadd.f32 %v757_v31, %v712_v19  ;;  %v1732_v42 = vpop.eup %1731 }
  0xdd   : > { %1737 = vtanh.f32 %v797_v30  ;;  %v1734_v57 = vpop.eup %1733 }
  0xde   : > { %1739 = vtanh.f32 %v798_v62  ;;  %v1736_v0 = vpop.eup %1735 }
  0xdf   : > { %1741 = vtanh.f32 %v799_v13  ;;  %v762_v63 = vpop.permute.xlu1 %761 }
  0xe0   : > { %1743 = vtanh.f32 %v800_v35  ;;  %v793_v49 = vadd.f32 %v762_v63, %v713_v1  ;;  %v794_v32 = vadd.f32 %v762_v63, %v714_v9  ;;  %v795_v2 = vadd.f32 %v762_v63, %v715_v26 }
  0xe1   : > { %1745 = vtanh.f32 %v789_v15  ;;  %v796_v41 = vadd.f32 %v762_v63, %v716_v44 }
  0xe2   : > { %1747 = vtanh.f32 %v790_v21 }
  0xe3   : > { %1749 = vtanh.f32 %v791_v60  ;;  %v868_v27 = vpop.permute.xlu1 %867 }
  0xe4   : > { %1751 = vtanh.f32 %v792_v23 }
  0xe5   : > { %1753 = vtanh.f32 %v793_v49 }
  0xe6   : > { %1755 = vtanh.f32 %v794_v32 }
  0xe7   : > { %v1738_v18 = vpop.eup %1737  ;;  %1757 = vtanh.f32 %v795_v2  ;;  %v878_v21 = vpop.permute.xlu1 %877 }
  0xe8   : > { %v1740_v52 = vpop.eup %1739  ;;  %1759 = vtanh.f32 %v796_v41 }
  0xe9   : > { %v1742_v19 = vpop.eup %1741 }
  0xea   : > { %v1744_v43 = vpop.eup %1743 }
  0xeb   : > { %v1746_v39 = vpop.eup %1745 }
  0xec   : > { %v1748_v51 = vpop.eup %1747  ;;  %v849_v20 = vpack.c.bf16 %v1746_v39, %v1730_v45  ;;  %v888_v39 = vpop.permute.xlu1 %887 }
  0xed   : > { %v1750_v5 = vpop.eup %1749  ;;  %v850_v56 = vpack.c.bf16 %v1748_v51, %v1732_v42 }
  0xee   : > { %v1752_v3 = vpop.eup %1751  ;;  %v851_v7 = vpack.c.bf16 %v1750_v5, %v1734_v57  ;;  %v893_v5 = vpop.permute.xlu0 %892 }
  0xef   : > { %v1754_v4 = vpop.eup %1753  ;;  %942 = vmatprep.subr.bf16.mxu0 %v850_v56  ;;  %v852_v8 = vpack.c.bf16 %v1752_v3, %v1736_v0 }
  0xf0   : > { %v1756_v53 = vpop.eup %1755  ;;  %943 = vmatpush1.bf16.msra.mxu0 %v849_v20  ;;  %v853_v48 = vpack.c.bf16 %v1738_v18, %v1754_v4 }
  0xf1   : > { %v1758_v24 = vpop.eup %1757  ;;  %1015 = vmatprep.subr.bf16.mxu1 %v852_v8  ;;  %v854_v46 = vpack.c.bf16 %v1740_v52, %v1756_v53 }
  0xf2   : > { %v1760_v38 = vpop.eup %1759  ;;  %1016 = vmatpush1.bf16.msra.mxu1 %v851_v7  ;;  %v855_v37 = vpack.c.bf16 %v1742_v19, %v1758_v24 }
  0xf3   : > { %944 = vmatprep.subr.bf16.mxu0 %v854_v46  ;;  %v856_v16 = vpack.c.bf16 %v1744_v43, %v1760_v38 }
  0xf4   : > { %945 = vmatpush1.bf16.msra.mxu0 %v853_v48 }
  0xf5   : > { %1017 = vmatprep.subr.bf16.mxu1 %v856_v16 }
  0xf6   : > { %1018 = vmatpush1.bf16.msra.mxu1 %v855_v37 }
  0xf7   : > { %1640 = vmatmul.mubr.msk.bf16.vlgmr.msra.gmra.mrb[0].mxu0 %vm925_vm0, %v1689_v25 }
  0xf8   : > { %980 = vmatprep.mubr.bf16.mxu0 %v1899_v6 }
  0xf9   : > { %1644 = vmatmul.mubr.msk.bf16.vlgmr.msra.gmra.mrb[0].mxu1 %vm925_vm0, %v1689_v25 }
  0xfa   : > { %1053 = vmatprep.mubr.bf16.mxu1 %v1899_v6 }
  0xff   : > { %1641 = vmatmul.mubr.msk.bf16.gmra.mrb[4].mxu0 %vm925_vm0, %v1690_v33 }
 0x100   : > { %990 = vmatprep.mubr.bf16.mxu0 %v1899_v6 }
 0x101   : > { %1645 = vmatmul.mubr.msk.bf16.gmra.mrb[4].mxu1 %vm925_vm0, %v1690_v33 }
 0x102   : > { %1063 = vmatprep.mubr.bf16.mxu1 %v1899_v6 }
 0x107   : > { %1642 = vmatmul.mubr.msk.bf16.gmra.mrb[8].mxu0 %vm925_vm0, %v1691_v55 }
 0x108   : > { %1000 = vmatprep.mubr.bf16.mxu0 %v1899_v6 }
 0x109   : > { %1646 = vmatmul.mubr.msk.bf16.gmra.mrb[8].mxu1 %vm925_vm0, %v1691_v55 }
 0x10a   : > { %1073 = vmatprep.mubr.bf16.mxu1 %v1899_v6 }
 0x10f   : > { %1643 = vmatmul.mubr.msk.bf16.gmra.mrb[12].mxu0 %vm925_vm0, %v1692_v12 }
 0x110   : > { %1252 = vmatprep.mubr.bf16.mxu0 %v1899_v6 }
 0x111   : > { %1647 = vmatmul.mubr.msk.bf16.gmra.mrb[12].mxu1 %vm925_vm0, %v1692_v12 }
 0x112   : > { %1325 = vmatprep.mubr.bf16.mxu1 %v1899_v6 }
 0x1ca   : > { %v972_v59 = vpop.f32.mrb[0].mxu0 }
 0x1cb   : > { %v973_v61 = vadd.f32 %v972_v59, %v868_v27  ;;  %v974_v10 = vpop.f32.mrb[1].mxu0 }
 0x1cc   : > { %v1045_v29 = vpop.f32.mrb[0].mxu1  ;;  %v975_v30 = vadd.f32 %v974_v10, %v868_v27  ;;  %v976_v62 = vpop.f32.mrb[2].mxu0 }
 0x1cd   : > { %1761 = vtanh.f32 %v973_v61  ;;  %v1046_v13 = vadd.f32 %v1045_v29, %v868_v27  ;;  %v1047_v31 = vpop.f32.mrb[1].mxu1  ;;  %v977_v11 = vadd.f32 %v976_v62, %v873_v28  ;;  %v978_v34 = vpop.f32.mrb[3].mxu0 }
 0x1ce   : > { %1763 = vtanh.f32 %v975_v30  ;;  %v1048_v35 = vadd.f32 %v1047_v31, %v868_v27  ;;  %v1049_v14 = vpop.f32.mrb[2].mxu1  ;;  %v979_v15 = vadd.f32 %v978_v34, %v873_v28 }
 0x1cf   : > { %1765 = vtanh.f32 %v1046_v13  ;;  %v1050_v54 = vadd.f32 %v1049_v14, %v873_v28  ;;  %v1051_v36 = vpop.f32.mrb[3].mxu1  ;;  %v903_v14 = vpop.permute.xlu0 %902 }
 0x1d0   : > { %1767 = vtanh.f32 %v1048_v35  ;;  %v1052_v22 = vadd.f32 %v1051_v36, %v873_v28 }
 0x1d1   : > { %1769 = vtanh.f32 %v977_v11  ;;  %v898_v11 = vpop.permute.xlu1 %897 }
 0x1d2   : > { %1771 = vtanh.f32 %v1050_v54  ;;  %v982_v45 = vpop.f32.mrb[4].mxu0 }
 0x1d3   : > { %1773 = vtanh.f32 %v979_v15  ;;  %v983_v60 = vadd.f32 %v982_v45, %v878_v21  ;;  %v984_v63 = vpop.f32.mrb[5].mxu0 }
 0x1d4   : > { %1775 = vtanh.f32 %v1052_v22  ;;  %v1055_v1 = vpop.f32.mrb[4].mxu1  ;;  %v985_v17 = vadd.f32 %v984_v63, %v878_v21  ;;  %v986_v23 = vpop.f32.mrb[6].mxu0 }
 0x1d5   : > { %1777 = vtanh.f32 %v983_v60  ;;  %v1056_v9 = vadd.f32 %v1055_v1, %v878_v21  ;;  %v1057_v26 = vpop.f32.mrb[5].mxu1  ;;  %v987_v49 = vadd.f32 %v986_v23, %v883_v40  ;;  %v988_v42 = vpop.f32.mrb[7].mxu0 }
 0x1d6   : > { %1779 = vtanh.f32 %v985_v17  ;;  %v1058_v44 = vadd.f32 %v1057_v26, %v878_v21  ;;  %v1059_v32 = vpop.f32.mrb[6].mxu1  ;;  %v989_v41 = vadd.f32 %v988_v42, %v883_v40 }
 0x1d7   : > { %v1762_v2 = vpop.eup %1761  ;;  %1781 = vtanh.f32 %v1056_v9  ;;  %v1060_v57 = vadd.f32 %v1059_v32, %v883_v40  ;;  %v1061_v0 = vpop.f32.mrb[7].mxu1 }
 0x1d8   : > { %v1764_v18 = vpop.eup %1763  ;;  %1783 = vtanh.f32 %v1058_v44  ;;  %v1062_v52 = vadd.f32 %v1061_v0, %v883_v40 }
 0x1d9   : > { %v1766_v19 = vpop.eup %1765  ;;  %1785 = vtanh.f32 %v987_v49 }
 0x1da   : > { %v1768_v43 = vpop.eup %1767  ;;  %1787 = vtanh.f32 %v1060_v57  ;;  %v992_v51 = vpop.f32.mrb[8].mxu0 }
 0x1db   : > { %v1770_v20 = vpop.eup %1769  ;;  %1789 = vtanh.f32 %v989_v41  ;;  %v993_v56 = vadd.f32 %v992_v51, %v888_v39  ;;  %v994_v3 = vpop.f32.mrb[9].mxu0 }
 0x1dc   : > { %v1772_v7 = vpop.eup %1771  ;;  %1791 = vtanh.f32 %v1062_v52  ;;  %v1065_v4 = vpop.f32.mrb[8].mxu1  ;;  %v995_v8 = vadd.f32 %v994_v3, %v888_v39  ;;  %v1124_v48 = vpack.c.bf16 %v1770_v20, %v1762_v2 }
 0x1dd   : > { %v996_v53 = vpop.f32.mrb[10].mxu0  ;;  %v1774_v24 = vpop.eup %1773  ;;  %1793 = vtanh.f32 %v993_v56  ;;  %v1066_v46 = vadd.f32 %v1065_v4, %v888_v39  ;;  %v1126_v25 = vpack.c.bf16 %v1772_v7, %v1766_v19 }
 0x1de   : > { %v1067_v38 = vpop.f32.mrb[9].mxu1  ;;  %v997_v37 = vadd.f32 %v996_v53, %v893_v5  ;;  %v998_v16 = vpop.f32.mrb[11].mxu0  ;;  %1795 = vtanh.f32 %v995_v8  ;;  %v1125_v27 = vpack.c.bf16 %v1774_v24, %v1764_v18 }
 0x1df   : > { %v1776_v33 = vpop.eup %1775  ;;  %v1068_v55 = vadd.f32 %v1067_v38, %v888_v39  ;;  %v1069_v12 = vpop.f32.mrb[10].mxu1  ;;  %1797 = vtanh.f32 %v1066_v46  ;;  %v999_v61 = vadd.f32 %v998_v16, %v893_v5 }
 0x1e0   : > { %v1778_v59 = vpop.eup %1777  ;;  %v1070_v28 = vadd.f32 %v1069_v12, %v893_v5  ;;  %v1071_v10 = vpop.f32.mrb[11].mxu1  ;;  %v1127_v29 = vpack.c.bf16 %v1776_v33, %v1768_v43  ;;  %1220 = vmatprep.subr.bf16.mxu0 %v1125_v27  ;;  %v1693_v27 = vld [vmem:[%s2466_s5] sm:$0xff]  }
 0x1e1   : > { %v1780_v30 = vpop.eup %1779  ;;  %1799 = vtanh.f32 %v1068_v55  ;;  %v1072_v62 = vadd.f32 %v1071_v10, %v893_v5  ;;  %1221 = vmatpush1.bf16.msra.mxu0 %v1124_v48  ;;  %v1156_v10 = vpop.permute.xlu0 %1155 }
 0x1e2   : > { %v1782_v13 = vpop.eup %1781  ;;  %1801 = vtanh.f32 %v997_v37  ;;  %1293 = vmatprep.subr.bf16.mxu1 %v1127_v29  ;;  %v1002_v34 = vpop.f32.mrb[12].mxu0 }
 0x1e3   : > { %v1784_v31 = vpop.eup %1783  ;;  %1803 = vtanh.f32 %v1070_v28  ;;  %1294 = vmatpush1.bf16.msra.mxu1 %v1126_v25  ;;  %v1003_v54 = vadd.f32 %v1002_v34, %v898_v11  ;;  %v1004_v15 = vpop.f32.mrb[13].mxu0  ;;  %v1695_v28 = vld [vmem:[%s2466_s5 + $0x10] sm:$0xff]  }
 0x1e4   : > { %v1786_v35 = vpop.eup %1785  ;;  %1805 = vtanh.f32 %v999_v61  ;;  %v1075_v22 = vpop.f32.mrb[12].mxu1  ;;  %v1005_v21 = vadd.f32 %v1004_v15, %v898_v11  ;;  %v1696_v61 = vld [vmem:[%s2466_s5 + $0x18] sm:$0xff]  }
 0x1e5   : > { %v1788_v36 = vpop.eup %1787  ;;  %1807 = vtanh.f32 %v1072_v62  ;;  %v1006_v45 = vpop.f32.mrb[14].mxu0  ;;  %v1128_v40 = vpack.c.bf16 %v1786_v35, %v1778_v59  ;;  %v1076_v63 = vadd.f32 %v1075_v22, %v898_v11  ;;  %v1694_v59 = vld [vmem:[%s2466_s5 + $0x8] sm:$0xff]  }
 0x1e6   : > { %v1790_v60 = vpop.eup %1789  ;;  %1809 = vtanh.f32 %v1003_v54  ;;  %v1077_v1 = vpop.f32.mrb[13].mxu1  ;;  %v1007_v17 = vadd.f32 %v1006_v45, %v903_v14  ;;  %v1130_v9 = vpack.c.bf16 %v1788_v36, %v1782_v13 }
 0x1e7   : > { %v1008_v23 = vpop.f32.mrb[15].mxu0  ;;  %v1792_v26 = vpop.eup %1791  ;;  %1811 = vtanh.f32 %v1005_v21  ;;  %v1078_v49 = vadd.f32 %v1077_v1, %v898_v11  ;;  %v1129_v44 = vpack.c.bf16 %v1790_v60, %v1780_v30 }
 0x1e8   : > { %v1079_v42 = vpop.f32.mrb[14].mxu1  ;;  %v1794_v32 = vpop.eup %1793  ;;  %1813 = vtanh.f32 %v1076_v63  ;;  %v1009_v57 = vadd.f32 %v1008_v23, %v903_v14  ;;  %v1131_v0 = vpack.c.bf16 %v1792_v26, %v1784_v31 }
 0x1e9   : > { %v1080_v2 = vadd.f32 %v1079_v42, %v903_v14  ;;  %v1081_v41 = vpop.f32.mrb[15].mxu1  ;;  %v1796_v18 = vpop.eup %1795  ;;  %1815 = vtanh.f32 %v1078_v49  ;;  %1222 = vmatprep.subr.bf16.mxu0 %v1129_v44 }
 0x1ea   : > { %v1082_v52 = vadd.f32 %v1081_v41, %v903_v14  ;;  %v1798_v19 = vpop.eup %1797  ;;  %1817 = vtanh.f32 %v1007_v17  ;;  %1295 = vmatprep.subr.bf16.mxu1 %v1131_v0  ;;  %1223 = vmatpush1.bf16.msra.mxu0 %v1128_v40  ;;  %v1151_v29 = vpop.permute.xlu1 %1150 }
 0x1eb   : > { %v1800_v43 = vpop.eup %1799  ;;  %1819 = vtanh.f32 %v1080_v2  ;;  %1296 = vmatpush1.bf16.msra.mxu1 %v1130_v9  ;;  %v1166_v30 = vpop.permute.xlu0 %1165 }
 0x1ec   : > { %v1802_v39 = vpop.eup %1801  ;;  %1821 = vtanh.f32 %v1009_v57 }
 0x1ed   : > { %v1804_v51 = vpop.eup %1803  ;;  %1823 = vtanh.f32 %v1082_v52  ;;  %v1132_v20 = vpack.c.bf16 %v1802_v39, %v1794_v32 }
 0x1ee   : > { %v1806_v5 = vpop.eup %1805  ;;  %v1134_v56 = vpack.c.bf16 %v1804_v51, %v1798_v19  ;;  %v1161_v62 = vpop.permute.xlu1 %1160 }
 0x1ef   : > { %v1808_v3 = vpop.eup %1807  ;;  %v1133_v7 = vpack.c.bf16 %v1806_v5, %v1796_v18  ;;  %v2427_v13 = vpop.permute.xlu0 %1175 }
 0x1f0   : > { %v1810_v4 = vpop.eup %1809  ;;  %v1135_v8 = vpack.c.bf16 %v1808_v3, %v1800_v43 }
 0x1f1   : > { %v1812_v53 = vpop.eup %1811  ;;  %1224 = vmatprep.subr.bf16.mxu0 %v1133_v7 }
 0x1f2   : > { %v1814_v48 = vpop.eup %1813  ;;  %1297 = vmatprep.subr.bf16.mxu1 %v1135_v8  ;;  %1225 = vmatpush1.bf16.msra.mxu0 %v1132_v20  ;;  %v2429_v31 = vpop.permute.xlu1 %1170 }
 0x1f3   : > { %v1816_v24 = vpop.eup %1815  ;;  %1298 = vmatpush1.bf16.msra.mxu1 %v1134_v56  ;;  %v2431_v23 = vpop.permute.xlu0 %1185 }
 0x1f4   : > { %v1818_v46 = vpop.eup %1817 }
 0x1f5   : > { %v1820_v38 = vpop.eup %1819  ;;  %v1136_v37 = vpack.c.bf16 %v1818_v46, %v1810_v4 }
 0x1f6   : > { %v1822_v16 = vpop.eup %1821  ;;  %v1138_v25 = vpack.c.bf16 %v1820_v38, %v1814_v48  ;;  %v2433_v9 = vpop.permute.xlu1 %1180 }
 0x1f7   : > { %v1824_v33 = vpop.eup %1823  ;;  %v1137_v55 = vpack.c.bf16 %v1822_v16, %v1812_v53  ;;  %v1414_v8 = vpop.permute.xlu0 %1413 }
 0x1f8   : > { %v1139_v12 = vpack.c.bf16 %v1824_v33, %v1816_v24 }
 0x1f9   : > { %1226 = vmatprep.subr.bf16.mxu0 %v1137_v55 }
 0x1fa   : > { %1299 = vmatprep.subr.bf16.mxu1 %v1139_v12  ;;  %1227 = vmatpush1.bf16.msra.mxu0 %v1136_v37  ;;  %v1409_v7 = vpop.permute.xlu1 %1408 }
 0x1fb   : > { %1300 = vmatpush1.bf16.msra.mxu1 %v1138_v25 }
 0x1fd   : > { %1652 = vmatmul.mubr.msk.bf16.vlgmr.msra.gmra.mrb[16].mxu0 %vm925_vm0, %v1693_v27 }
 0x1fe   : > { %1656 = vmatmul.mubr.msk.bf16.vlgmr.msra.gmra.mrb[16].mxu1 %vm925_vm0, %v1693_v27  ;;  %1262 = vmatprep.mubr.bf16.mxu0 %v1899_v6 }
 0x1ff   : > { %1335 = vmatprep.mubr.bf16.mxu1 %v1899_v6 }
 0x205   : > { %1653 = vmatmul.mubr.msk.bf16.gmra.mrb[20].mxu0 %vm925_vm0, %v1694_v59 }
 0x206   : > { %1657 = vmatmul.mubr.msk.bf16.gmra.mrb[20].mxu1 %vm925_vm0, %v1694_v59  ;;  %1272 = vmatprep.mubr.bf16.mxu0 %v1899_v6 }
 0x207   : > { %1345 = vmatprep.mubr.bf16.mxu1 %v1899_v6 }
 0x20d   : > { %1654 = vmatmul.mubr.msk.bf16.gmra.mrb[24].mxu0 %vm925_vm0, %v1695_v28 }
 0x20e   : > { %1658 = vmatmul.mubr.msk.bf16.gmra.mrb[24].mxu1 %vm925_vm0, %v1695_v28  ;;  %1282 = vmatprep.mubr.bf16.mxu0 %v1899_v6 }
 0x20f   : > { %1355 = vmatprep.mubr.bf16.mxu1 %v1899_v6 }
 0x215   : > { %1655 = vmatmul.mubr.msk.bf16.gmra.mrb[28].mxu0 %vm925_vm0, %v1696_v61 }
 0x216   : > { %1659 = vmatmul.mubr.msk.bf16.gmra.mrb[28].mxu1 %vm925_vm0, %v1696_v61 }
 0x2d0   : > { %v1254_v11 = vpop.f32.mrb[16].mxu0 }
 0x2d1   : > { %v1255_v34 = vadd.f32 %v1254_v11, %v1151_v29  ;;  %v1327_v35 = vpop.f32.mrb[16].mxu1  ;;  %v1256_v6 = vpop.f32.mrb[17].mxu0 }
 0x2d2   : > { %v1328_v14 = vadd.f32 %v1327_v35, %v1151_v29  ;;  %v1257_v54 = vadd.f32 %v1256_v6, %v1151_v29  ;;  %v1329_v15 = vpop.f32.mrb[17].mxu1  ;;  %v1258_v36 = vpop.f32.mrb[18].mxu0 }
 0x2d3   : > { %1825 = vtanh.f32 %v1255_v34  ;;  %v1330_v22 = vadd.f32 %v1329_v15, %v1151_v29  ;;  %v1259_v21 = vadd.f32 %v1258_v36, %v1156_v10  ;;  %v1331_v45 = vpop.f32.mrb[18].mxu1  ;;  %v1260_v40 = vpop.f32.mrb[19].mxu0 }
 0x2d4   : > { %1827 = vtanh.f32 %v1328_v14  ;;  %v1332_v60 = vadd.f32 %v1331_v45, %v1156_v10  ;;  %v1333_v63 = vpop.f32.mrb[19].mxu1  ;;  %v1261_v1 = vadd.f32 %v1260_v40, %v1156_v10 }
 0x2d5   : > { %1829 = vtanh.f32 %v1257_v54  ;;  %v1334_v17 = vadd.f32 %v1333_v63, %v1156_v10 }
 0x2d6   : > { %1831 = vtanh.f32 %v1330_v22  ;;  %v1419_v22 = vpop.permute.xlu1 %1418 }
 0x2d7   : > { %1833 = vtanh.f32 %v1259_v21 }
 0x2d8   : > { %1835 = vtanh.f32 %v1332_v60  ;;  %v1264_v26 = vpop.f32.mrb[20].mxu0 }
 0x2d9   : > { %1837 = vtanh.f32 %v1261_v1  ;;  %v1265_v49 = vadd.f32 %v1264_v26, %v1161_v62  ;;  %v1337_v42 = vpop.f32.mrb[20].mxu1  ;;  %v1266_v44 = vpop.f32.mrb[21].mxu0 }
 0x2da   : > { %1839 = vtanh.f32 %v1334_v17  ;;  %v1338_v32 = vadd.f32 %v1337_v42, %v1161_v62  ;;  %v1267_v2 = vadd.f32 %v1266_v44, %v1161_v62  ;;  %v1339_v57 = vpop.f32.mrb[21].mxu1  ;;  %v1268_v41 = vpop.f32.mrb[22].mxu0 }
 0x2db   : > { %1841 = vtanh.f32 %v1265_v49  ;;  %v1340_v0 = vadd.f32 %v1339_v57, %v1161_v62  ;;  %v1269_v18 = vadd.f32 %v1268_v41, %v1166_v30  ;;  %v1341_v52 = vpop.f32.mrb[22].mxu1  ;;  %v1270_v19 = vpop.f32.mrb[23].mxu0 }
 0x2dc   : > { %1843 = vtanh.f32 %v1338_v32  ;;  %v1342_v43 = vadd.f32 %v1341_v52, %v1166_v30  ;;  %v1343_v39 = vpop.f32.mrb[23].mxu1  ;;  %v1271_v20 = vadd.f32 %v1270_v19, %v1166_v30  ;;  %v1424_v44 = vpop.permute.xlu0 %1423 }
 0x2dd   : > { %v1826_v51 = vpop.eup %1825  ;;  %1845 = vtanh.f32 %v1267_v2  ;;  %v1344_v56 = vadd.f32 %v1343_v39, %v1166_v30 }
 0x2de   : > { %v1828_v5 = vpop.eup %1827  ;;  %1847 = vtanh.f32 %v1340_v0  ;;  %v1446_v53 = vmul.f32 %v1826_v51, %v1409_v7 }
 0x2df   : > { %v1830_v3 = vpop.eup %1829  ;;  %1849 = vtanh.f32 %v1269_v18  ;;  %v1448_v48 = vmul.f32 %v1828_v5, %v1409_v7 }
 0x2e0   : > { %v1832_v4 = vpop.eup %1831  ;;  %1851 = vtanh.f32 %v1342_v43  ;;  %v1274_v24 = vpop.f32.mrb[24].mxu0  ;;  %v1447_v38 = vmul.f32 %v1830_v3, %v1409_v7 }
 0x2e1   : > { %v1834_v46 = vpop.eup %1833  ;;  %v1449_v37 = vmul.f32 %v1832_v4, %v1409_v7  ;;  %1853 = vtanh.f32 %v1271_v20  ;;  %v1275_v16 = vadd.f32 %v1274_v24, %v2429_v31  ;;  %v1347_v25 = vpop.f32.mrb[24].mxu1 }
 0x2e2   : > { %v1276_v33 = vpop.f32.mrb[25].mxu0  ;;  %v1836_v55 = vpop.eup %1835  ;;  %v1450_v12 = vmul.f32 %v1834_v46, %v1414_v8  ;;  %1855 = vtanh.f32 %v1344_v56  ;;  %v1348_v27 = vadd.f32 %v1347_v25, %v2429_v31 }
 0x2e3   : > { %v1277_v59 = vadd.f32 %v1276_v33, %v2429_v31  ;;  %v1349_v28 = vpop.f32.mrb[25].mxu1  ;;  %v1278_v61 = vpop.f32.mrb[26].mxu0  ;;  %v1452_v29 = vmul.f32 %v1836_v55, %v1414_v8  ;;  %1857 = vtanh.f32 %v1275_v16 }
 0x2e4   : > { %v1838_v10 = vpop.eup %1837  ;;  %v1350_v30 = vadd.f32 %v1349_v28, %v2429_v31  ;;  %v1279_v62 = vadd.f32 %v1278_v61, %v2427_v13  ;;  %v1351_v11 = vpop.f32.mrb[26].mxu1  ;;  %v1478_v6 = vadd.f32 %v1450_v12, %v1446_v53  ;;  %1859 = vtanh.f32 %v1348_v27 }
 0x2e5   : > { %v1280_v34 = vpop.f32.mrb[27].mxu0  ;;  %v1840_v35 = vpop.eup %1839  ;;  %v1451_v14 = vmul.f32 %v1838_v10, %v1414_v8  ;;  %v1352_v54 = vadd.f32 %v1351_v11, %v2427_v13  ;;  %v1504_v21 = vadd.f32 %v1452_v29, %v1448_v48  ;;  %1861 = vtanh.f32 %v1277_v59 }
 0x2e6   : > { %v1353_v15 = vpop.f32.mrb[27].mxu1  ;;  %v1842_v36 = vpop.eup %1841  ;;  %v1453_v45 = vmul.f32 %v1840_v35, %v1414_v8  ;;  %v1281_v40 = vadd.f32 %v1280_v34, %v2427_v13  ;;  %1863 = vtanh.f32 %v1350_v30 }
 0x2e7   : > { %v1844_v60 = vpop.eup %1843  ;;  %v1491_v31 = vadd.f32 %v1451_v14, %v1447_v38  ;;  %v1454_v63 = vmul.f32 %v1842_v36, %v1419_v22  ;;  %v1354_v1 = vadd.f32 %v1353_v15, %v2427_v13  ;;  %1865 = vtanh.f32 %v1279_v62  ;;  %v1429_v33 = vpop.permute.xlu1 %1428 }
 0x2e8   : > { %v1846_v17 = vpop.eup %1845  ;;  %v1517_v26 = vadd.f32 %v1453_v45, %v1449_v37  ;;  %v1456_v49 = vmul.f32 %v1844_v60, %v1419_v22  ;;  %1867 = vtanh.f32 %v1352_v54  ;;  %v1284_v57 = vpop.f32.mrb[28].mxu0 }
 0x2e9   : > { %v1848_v42 = vpop.eup %1847  ;;  %v1479_v32 = vadd.f32 %v1478_v6, %v1454_v63  ;;  %v1455_v2 = vmul.f32 %v1846_v17, %v1419_v22  ;;  %1869 = vtanh.f32 %v1281_v40  ;;  %v1285_v52 = vadd.f32 %v1284_v57, %v2433_v9  ;;  %v1357_v19 = vpop.f32.mrb[28].mxu1 }
 0x2ea   : > { %v1850_v41 = vpop.eup %1849  ;;  %v1505_v0 = vadd.f32 %v1504_v21, %v1456_v49  ;;  %v1457_v18 = vmul.f32 %v1848_v42, %v1419_v22  ;;  %v1286_v43 = vpop.f32.mrb[29].mxu0  ;;  %1871 = vtanh.f32 %v1354_v1  ;;  %v1358_v20 = vadd.f32 %v1357_v19, %v2433_v9 }
 0x2eb   : > { %v1852_v39 = vpop.eup %1851  ;;  %v1492_v13 = vadd.f32 %v1491_v31, %v1455_v2  ;;  %v1458_v51 = vmul.f32 %v1850_v41, %v1424_v44  ;;  %v1359_v5 = vpop.f32.mrb[29].mxu1  ;;  %1873 = vtanh.f32 %v1285_v52  ;;  %v1287_v8 = vadd.f32 %v1286_v43, %v2433_v9 }
 0x2ec   : > { %v1288_v56 = vpop.f32.mrb[30].mxu0  ;;  %v1854_v3 = vpop.eup %1853  ;;  %v1518_v7 = vadd.f32 %v1517_v26, %v1457_v18  ;;  %v1460_v4 = vmul.f32 %v1852_v39, %v1424_v44  ;;  %1875 = vtanh.f32 %v1358_v20  ;;  %v1360_v37 = vadd.f32 %v1359_v5, %v2433_v9 }
 0x2ed   : > { %v1361_v53 = vpop.f32.mrb[30].mxu1  ;;  %v1290_v48 = vpop.f32.mrb[31].mxu0  ;;  %v1480_v46 = vadd.f32 %v1479_v32, %v1458_v51  ;;  %v1459_v38 = vmul.f32 %v1854_v3, %v1424_v44  ;;  %1877 = vtanh.f32 %v1287_v8  ;;  %v1289_v27 = vadd.f32 %v1288_v56, %v2431_v23 }
 0x2ee   : > { %v1856_v24 = vpop.eup %1855  ;;  %v1363_v16 = vpop.f32.mrb[31].mxu1  ;;  %v1506_v55 = vadd.f32 %v1505_v0, %v1460_v4  ;;  %1879 = vtanh.f32 %v1360_v37  ;;  %v1362_v10 = vadd.f32 %v1361_v53, %v2431_v23  ;;  %v1291_v9 = vadd.f32 %v1290_v48, %v2431_v23 }
 0x2ef   : > { %v1858_v25 = vpop.eup %1857  ;;  %v1461_v12 = vmul.f32 %v1856_v24, %v1424_v44  ;;  %v1493_v28 = vadd.f32 %v1492_v13, %v1459_v38  ;;  %1881 = vtanh.f32 %v1289_v27  ;;  %v1364_v6 = vadd.f32 %v1363_v16, %v2431_v23  ;;  %v1434_v54 = vpop.permute.xlu0 %1433 }
 0x2f0   : > { %v1860_v59 = vpop.eup %1859  ;;  %v1462_v61 = vmul.f32 %v1858_v25, %v1429_v33  ;;  %1883 = vtanh.f32 %v1362_v10  ;;  %v1439_v49 = vpop.permute.xlu1 %1438 }
 0x2f1   : > { %v1862_v29 = vpop.eup %1861  ;;  %v1519_v30 = vadd.f32 %v1518_v7, %v1461_v12  ;;  %v1464_v62 = vmul.f32 %v1860_v59, %v1429_v33  ;;  %1885 = vtanh.f32 %v1291_v9 }
 0x2f2   : > { %v1864_v11 = vpop.eup %1863  ;;  %v1481_v34 = vadd.f32 %v1480_v46, %v1462_v61  ;;  %v1463_v35 = vmul.f32 %v1862_v29, %v1429_v33  ;;  %1887 = vtanh.f32 %v1364_v6 }
 0x2f3   : > { %v1866_v14 = vpop.eup %1865  ;;  %v1507_v15 = vadd.f32 %v1506_v55, %v1464_v62  ;;  %v1465_v36 = vmul.f32 %v1864_v11, %v1429_v33  ;;  %v1444_v39 = vpop.permute.xlu0 %1443  ;;  %v1900_v62 = vmov 1966171168  }
 0x2f4   : > { %v1868_v22 = vpop.eup %1867  ;;  %v1494_v21 = vadd.f32 %v1493_v28, %v1463_v35  ;;  %v1466_v45 = vmul.f32 %v1866_v14, %v1434_v54  ;;  %v1551_v9 = vunpack.c.l.s4 %v1900_v62  ;;  %v1534_v11 = vpop.permute.xlu1 %1533 }
 0x2f5   : > { %v1870_v40 = vpop.eup %1869  ;;  %v1520_v60 = vadd.f32 %v1519_v30, %v1465_v36  ;;  %v1468_v31 = vmul.f32 %v1868_v22, %v1434_v54  ;;  %v1539_v36 = vrot.slane %v1534_v11, %v2127_v58 }
 0x2f6   : > { %v1872_v63 = vpop.eup %1871  ;;  %v1482_v1 = vadd.f32 %v1481_v34, %v1466_v45  ;;  %v1467_v17 = vmul.f32 %v1870_v40, %v1434_v54  ;;  %v1552_v45 = vunpack.c.0.s8 %v1551_v9 }
 0x2f7   : > { %v1874_v26 = vpop.eup %1873  ;;  %v1508_v42 = vadd.f32 %v1507_v15, %v1468_v31  ;;  %v1469_v44 = vmul.f32 %v1872_v63, %v1434_v54 }
 0x2f8   : > { %v1876_v23 = vpop.eup %1875  ;;  %v1495_v32 = vadd.f32 %v1494_v21, %v1467_v17  ;;  %v1470_v2 = vmul.f32 %v1874_v26, %v1439_v49 }
 0x2f9   : > { %v1878_v57 = vpop.eup %1877  ;;  %v1521_v41 = vadd.f32 %v1520_v60, %v1469_v44  ;;  %v1472_v0 = vmul.f32 %v1876_v23, %v1439_v49 }
 0x2fa   : > { %v1880_v18 = vpop.eup %1879  ;;  %v1483_v52 = vadd.f32 %v1482_v1, %v1470_v2  ;;  %v1471_v19 = vmul.f32 %v1878_v57, %v1439_v49 }
 0x2fb   : > { %v1882_v43 = vpop.eup %1881  ;;  %v1509_v13 = vadd.f32 %v1508_v42, %v1472_v0  ;;  %v1473_v51 = vmul.f32 %v1880_v18, %v1439_v49  ;;  %v1555_v49 = vsub.s32 %v1552_v45, %v2115_v50 }
 0x2fc   : > { %v1884_v20 = vpop.eup %1883  ;;  %v1496_v5 = vadd.f32 %v1495_v32, %v1471_v19  ;;  %v1474_v56 = vmul.f32 %v1882_v43, %v1444_v39 }
 0x2fd   : > { %v1886_v3 = vpop.eup %1885  ;;  %v1522_v7 = vadd.f32 %v1521_v41, %v1473_v51  ;;  %v1476_v4 = vmul.f32 %v1884_v20, %v1444_v39 }
 0x2fe   : > { %v1888_v8 = vpop.eup %1887  ;;  %v1484_v53 = vadd.f32 %v1483_v52, %v1474_v56  ;;  %v1475_v48 = vmul.f32 %v1886_v3, %v1444_v39 }
 0x2ff   : > { %v1510_v24 = vadd.f32 %v1509_v13, %v1476_v4  ;;  %v1477_v46 = vmul.f32 %v1888_v8, %v1444_v39 }
 0x300   : > { %v1485_v38 = vrot.slane %v1484_v53, 4  ;;  %v1497_v37 = vadd.f32 %v1496_v5, %v1475_v48 }
 0x301   : > { %v1511_v16 = vrot.slane %v1510_v24, 4  ;;  %v1523_v25 = vadd.f32 %v1522_v7, %v1477_v46 }
 0x302   : > { %v1486_v33 = vadd.f32 %v1485_v38, %v1484_v53  ;;  %v1498_v55 = vrot.slane %v1497_v37, 4 }
 0x303   : > { %v1512_v12 = vadd.f32 %v1511_v16, %v1510_v24  ;;  %v1524_v27 = vrot.slane %v1523_v25, 4 }
 0x304   : > { %v1487_v59 = vrot.slane %v1486_v33, 2  ;;  %v1499_v28 = vadd.f32 %v1498_v55, %v1497_v37 }
 0x305   : > { %v1513_v61 = vrot.slane %v1512_v12, 2  ;;  %v1525_v10 = vadd.f32 %v1524_v27, %v1523_v25 }
 0x306   : > { %v1488_v29 = vadd.f32 %v1487_v59, %v1486_v33  ;;  %v1500_v30 = vrot.slane %v1499_v28, 2 }
 0x307   : > { %v1514_v34 = vadd.f32 %v1513_v61, %v1512_v12  ;;  %v1526_v35 = vrot.slane %v1525_v10, 2 }
 0x308   : > { %v1489_v6 = vrot.slane %v1488_v29, 1  ;;  %v1501_v14 = vadd.f32 %v1500_v30, %v1499_v28 }
 0x309   : > { %v1515_v54 = vrot.slane %v1514_v34, 1  ;;  %v1527_v15 = vadd.f32 %v1526_v35, %v1525_v10 }
 0x30a   : > { %v1490_v22 = vadd.f32 %v1489_v6, %v1488_v29  ;;  %v1502_v21 = vrot.slane %v1501_v14, 1 }
 0x30b   : > { %v1516_v40 = vadd.f32 %v1515_v54, %v1514_v34  ;;  %v1528_v60 = vrot.slane %v1527_v15, 1 }
 0x30c   : > { %v1540_v31 = vadd.f32 %v1539_v36, %v1490_v22  ;;  %v1503_v63 = vadd.f32 %v1502_v21, %v1501_v14 }
 0x30d   : > { %v1542_v1 = vadd.f32 %v1539_v36, %v1516_v40  ;;  %v1529_v17 = vadd.f32 %v1528_v60, %v1527_v15 }
 0x30e   : > { %v1541_v26 = vadd.f32 %v1539_v36, %v1503_v63 }
 0x30f   : > { %v1543_v42 = vadd.f32 %v1539_v36, %v1529_v17 }
 0x310   : > { %v1548_v44 = vcombine.low %v1540_v31, %v1541_v26 }
 0x311   : > { %v1549_v23 = vcombine.low %v1542_v1, %v1543_v42 }
 0x312   : > { %v1556_v32 = vrot.slane %v1548_v44, %v1555_v49 }
 0x313   : > { %v1563_v2 = vrot.slane %v1549_v23, %v1555_v49 }
 0x315   : > { %v1564_v57 = vcombine.low %v1556_v32, %v1563_v2 }
 0x317   : > { %v1571_v58 = vrot.slane %v1564_v57, %v1555_v49 }
 0x319   : > { %1577 = vst.msk [vmem:[%s334_s8] sm:$0xf] %vm1575_vm1, %v1571_v58 }
 0x31a PF: > { %s21_s11 = sadd.s32 1, %s1895_s11  }
 0x31b   : > { %p18_p4 = scmp.ge.s32.totalorder %s21_s11, 4  }
 0x31d   :  { %20 = sbr.rel (!%p18_p4) target bundleno = 3 (0x3), region = 86 }

</bundles_post_ra>
